<compile_context>
chip_gen: v7x
topology: tpu7x:2x2x1
jax: 0.10.0
libtpu: 0.0.40
codegen_flags: <defaults>
</compile_context>

<pallas_src>
import functools

import jax
import jax.numpy as jnp
from jax.experimental import pallas as pl
from jax.experimental.pallas import tpu as pltpu

LN_EPS = 1e-5


def _layernorm(x, eps=LN_EPS):
    # LayerNorm over last axis, gamma=1, beta=0 (PyTorch default init).
    mean = jnp.mean(x, axis=-1, keepdims=True)
    var = jnp.mean((x - mean) ** 2, axis=-1, keepdims=True)
    return (x - mean) * jax.lax.rsqrt(var + eps)


def _round_up(x, m):
    return ((x + m - 1) // m) * m


def _pick_bblk(batch, lq, target_rows=256):
    """Batch elements per grid step so bblk*lq ~ target_rows and bblk | batch."""
    bblk = max(1, min(batch, target_rows // max(lq, 1)))
    while batch % bblk:
        bblk -= 1
    if bblk != batch and (bblk * lq) % 8 != 0:
        # Keep the block full-extent so the (8, 128) block rule is satisfied.
        bblk = batch
    return bblk


def _cma_kernel(point_ref, know_ref, wq_ref, wkv_ref, wffn_ref,
                fused_ref, attmap_ref,
                *, bblk, lq, lk, lk_pad, hidden, mm_dtype):
    point = point_ref[...]                      # (bblk*lq, hidden)     f32
    know = know_ref[...]                        # (bblk*lk_pad, k_dim)  f32

    q_norm = _layernorm(point)                  # layer_norm(pointFeat)
    kv_norm = _layernorm(know)                  # know_layer_norm(knowFeat);
                                                # zero-padded rows stay zero.

    # Query projection (1/sqrt(hidden) folded into wq in the wrapper).
    q = jnp.dot(q_norm.astype(mm_dtype), wq_ref[...].astype(mm_dtype),
                preferred_element_type=jnp.float32)         # (bblk*lq, hidden)
    # Fused key/value projection, then static slices (free).
    kv = jnp.dot(kv_norm.astype(mm_dtype), wkv_ref[...].astype(mm_dtype),
                 preferred_element_type=jnp.float32)        # (bblk*lk_pad, 2*hidden)
    k = kv[:, :hidden]
    v = kv[:, hidden:]

    qb = q.reshape(bblk, lq, hidden)
    kb = k.reshape(bblk, lk_pad, hidden)
    vb = v.reshape(bblk, lk_pad, hidden)

    # Pre-softmax scaled scores == att_map.  Contract the last dims directly,
    # no explicit K.T is materialized.
    scores = jnp.einsum("bqd,bkd->bqk", qb, kb,
                        preferred_element_type=jnp.float32)  # (bblk, lq, lk_pad)
    attmap_ref[...] = scores.astype(attmap_ref.dtype)        # lane-dense store

    if lk_pad > lk:
        # Mask zero-padded key columns out of the softmax.
        col = jax.lax.broadcasted_iota(jnp.int32, scores.shape, 2)
        scores = jnp.where(col < lk, scores, -jnp.inf)

    # Softmax over the key axis (f32 math; reciprocal on the EUP).
    m = jnp.max(scores, axis=-1, keepdims=True)
    e = jnp.exp(scores - m)
    denom = jnp.sum(e, axis=-1, keepdims=True)
    attn_w = e * pl.reciprocal(denom, approx=True)

    attn_vec = jnp.einsum("bqk,bkd->bqd",
                          attn_w.astype(mm_dtype), vb.astype(mm_dtype),
                          preferred_element_type=jnp.float32)  # (bblk, lq, hidden)

    # Residual + ReLU (dropout == identity in eval mode).
    residual = point + jnp.maximum(attn_vec.reshape(bblk * lq, hidden), 0.0)
    r_norm = _layernorm(residual)
    fused = jnp.dot(r_norm.astype(mm_dtype), wffn_ref[...].astype(mm_dtype),
                    preferred_element_type=jnp.float32)      # (bblk*lq, out_pad)
    fused_ref[...] = fused.astype(fused_ref.dtype)           # lane-dense store


def cross_modal_attention(point_feat, know_feat, wq, wk, wv, wffn,
                          hidden_dim, *, matmul_dtype=jnp.float32):
    """Forward pass of CrossModalAttention.

    point_feat: (B, Lq, g_dim) with g_dim == hidden_dim.
    know_feat:  (B, Lk, k_dim).
    wq: (hidden, g_dim), wk/wv: (hidden, k_dim), wffn: (out_dim, hidden)
        -- PyTorch nn.Linear (out, in) layout; biases are zero per init_weights.
    Returns (fused_feature (B, Lq, out_dim), att_map (B, Lq, Lk)).
    """
    B, Lq, D = point_feat.shape
    _, Lk, Kd = know_feat.shape
    H = int(hidden_dim)
    out_dim = wffn.shape[0]
    assert D == H, "module requires g_dim == hidden_dim (LayerNorm(hidden_dim))"

    # --- Weight prep (wrapper-side, one-time XLA ops) ---------------------
    d_k = float(H) ** 0.5
    wq_t = (wq.T / d_k).astype(jnp.float32)                 # (D, H), scale folded
    wkv_t = jnp.concatenate([wk.T, wv.T], axis=1)           # (Kd, 2H) fused K/V
    out_p = _round_up(out_dim, 128)
    wffn_t = wffn.T                                         # (H, out_dim)
    if out_p > out_dim:
        wffn_t = jnp.pad(wffn_t, ((0, 0), (0, out_p - out_dim)))

    # --- Activation prep: flatten rows, pad Lk to lane width --------------
    lk_p = _round_up(Lk, 128)
    know_p = know_feat
    if lk_p > Lk:
        know_p = jnp.pad(know_feat, ((0, 0), (0, lk_p - Lk), (0, 0)))

    point_2d = point_feat.reshape(B * Lq, D)
    know_2d = know_p.reshape(B * lk_p, Kd)

    bblk = _pick_bblk(B, Lq)
    grid = (B // bblk,)

    kernel = functools.partial(
        _cma_kernel, bblk=bblk, lq=Lq, lk=Lk, lk_pad=lk_p, hidden=H,
        mm_dtype=matmul_dtype)

    grid_spec = pltpu.PrefetchScalarGridSpec(
        num_scalar_prefetch=0,
        grid=grid,
        in_specs=[
            pl.BlockSpec((bblk * Lq, D), lambda b: (b, 0)),        # point rows
            pl.BlockSpec((bblk * lk_p, Kd), lambda b: (b, 0)),     # know rows
            pl.BlockSpec((D, H), lambda b: (0, 0)),                # wq (scaled)
            pl.BlockSpec((Kd, 2 * H), lambda b: (0, 0)),           # wk||wv
            pl.BlockSpec((H, out_p), lambda b: (0, 0)),            # wffn (padded)
        ],
        out_specs=[
            pl.BlockSpec((bblk * Lq, out_p), lambda b: (b, 0)),    # fused
            pl.BlockSpec((bblk, Lq, lk_p), lambda b: (b, 0, 0)),   # att_map
        ],
    )

    fused_p, att_p = pl.pallas_call(
        kernel,
        grid_spec=grid_spec,
        out_shape=(
            jax.ShapeDtypeStruct((B * Lq, out_p), point_feat.dtype),
            jax.ShapeDtypeStruct((B, Lq, lk_p), jnp.float32),
        ),
        compiler_params=pltpu.CompilerParams(
            dimension_semantics=("parallel",)),
    )(point_2d, know_2d, wq_t, wkv_t, wffn_t)

    fused = fused_p[:, :out_dim].reshape(B, Lq, out_dim)
    att_map = att_p[:, :, :Lk]
    return fused, att_map


def _xavier_uniform(key, out_features, in_features):
    bound = (6.0 / (in_features + out_features)) ** 0.5
    return jax.random.uniform(key, (out_features, in_features),
                              jnp.float32, -bound, bound)


def _reference(point_feat, know_feat, wq, wk, wv, wffn, hidden_dim):
    # Pure-JAX mirror of the PyTorch forward (eval mode, init weights).
    q_norm = _layernorm(point_feat)
    k_norm = _layernorm(know_feat)
    Q = q_norm @ wq.T
    K = k_norm @ wk.T
    V = k_norm @ wv.T
    scores = jnp.einsum("bqd,bkd->bqk", Q, K) / (hidden_dim ** 0.5)
    w = jax.nn.softmax(scores, axis=-1)
    av = jnp.einsum("bqk,bkd->bqd", w, V)
    residual = point_feat + jnp.maximum(av, 0.0)
    fused = _layernorm(residual) @ wffn.T
    return fused, scores


if __name__ == "__main__":
    # Dims: g_dim must equal hidden_dim for the PyTorch module to be consistent.
    k_dim, g_dim, hidden_dim, output_dim = 16, 32, 32, 32
    B, Lq, Lk = 2, 8, 8

    key = jax.random.PRNGKey(0)
    k0, k1, k2, k3, k4, k5 = jax.random.split(key, 6)

    point_feat = jax.random.normal(k0, (B, Lq, g_dim), jnp.float32)
    know_feat = jax.random.normal(k1, (B, Lk, k_dim), jnp.float32)

    # nn.Linear weight shape is (out, in); xavier_uniform init; biases = 0.
    wq = _xavier_uniform(k2, hidden_dim, g_dim)
    wk = _xavier_uniform(k3, hidden_dim, k_dim)
    wv = _xavier_uniform(k4, hidden_dim, k_dim)
    wffn = _xavier_uniform(k5, output_dim, hidden_dim)

    fn = jax.jit(functools.partial(cross_modal_attention, hidden_dim=hidden_dim))
    fused, att_map = fn(point_feat, know_feat, wq, wk, wv, wffn)
    jax.block_until_ready((fused, att_map))

    # Sanity check against a pure-JAX reference of the same math.
    ref_fused, ref_map = _reference(point_feat, know_feat, wq, wk, wv, wffn,
                                    hidden_dim)
    # att_map only differs by fp reordering (scale folded into wq).
    assert jnp.allclose(att_map, ref_map, atol=1e-4, rtol=1e-4), "att_map mismatch"
    # fused goes through the EUP approximate reciprocal -> small extra slack.
    assert jnp.allclose(fused, ref_fused, atol=2e-3, rtol=2e-3), "fused mismatch"

    print("KERNEL_OK")
</pallas_src>

<mosaic_0001>
module attributes {stable_mosaic.version = 11 : i64} {
  func.func @_cma_kernel(%arg0: i32, %arg1: memref<16x32xf32, #tpu.memory_space<vmem>>, %arg2: memref<256x16xf32, #tpu.memory_space<vmem>>, %arg3: memref<32x32xf32, #tpu.memory_space<vmem>>, %arg4: memref<16x64xf32, #tpu.memory_space<vmem>>, %arg5: memref<32x128xf32, #tpu.memory_space<vmem>>, %arg6: memref<16x128xf32, #tpu.memory_space<vmem>>, %arg7: memref<2x8x128xf32, #tpu.memory_space<vmem>>) attributes {dimension_semantics = [#tpu.dimension_semantics<parallel>], iteration_bounds = array<i64: 1>, scalar_prefetch = 0 : i64, scratch_operands = 0 : i64, tpu.core_type = #tpu.core_type<tc>, window_params = [{transform_indices = @transform_0, window_bounds = array<i64: 16, 32>}, {transform_indices = @transform_1, window_bounds = array<i64: 256, 16>}, {pipeline_mode = #tpu.pipeline_mode<synchronous>, transform_indices = @transform_2, window_bounds = array<i64: 32, 32>}, {pipeline_mode = #tpu.pipeline_mode<synchronous>, transform_indices = @transform_3, window_bounds = array<i64: 16, 64>}, {pipeline_mode = #tpu.pipeline_mode<synchronous>, transform_indices = @transform_4, window_bounds = array<i64: 32, 128>}, {transform_indices = @transform_5, window_bounds = array<i64: 16, 128>}, {transform_indices = @transform_6, window_bounds = array<i64: 2, 8, 128>}]} {
    %c0 = arith.constant 0 : index
    %c0_0 = arith.constant 0 : index
    %0 = vector.load %arg1[%c0, %c0_0] : memref<16x32xf32, #tpu.memory_space<vmem>>, vector<16x32xf32>
    %c0_1 = arith.constant 0 : index
    %c0_2 = arith.constant 0 : index
    %1 = vector.load %arg2[%c0_1, %c0_2] : memref<256x16xf32, #tpu.memory_space<vmem>>, vector<256x16xf32>
    %cst = arith.constant dense<0.000000e+00> : vector<16xf32>
    %2 = vector.multi_reduction <add>, %0, %cst [1] : vector<16x32xf32> to vector<16xf32>
    %3 = vector.shape_cast %2 : vector<16xf32> to vector<16x1xf32>
    %cst_3 = arith.constant 3.200000e+01 : f32
    %4 = vector.broadcast %cst_3 : f32 to vector<16x1xf32>
    %5 = arith.divf %3, %4 : vector<16x1xf32>
    %6 = vector.broadcast %5 : vector<16x1xf32> to vector<16x32xf32>
    %7 = arith.subf %0, %6 : vector<16x32xf32>
    %8 = arith.mulf %7, %7 : vector<16x32xf32>
    %cst_4 = arith.constant dense<0.000000e+00> : vector<16xf32>
    %9 = vector.multi_reduction <add>, %8, %cst_4 [1] : vector<16x32xf32> to vector<16xf32>
    %10 = vector.shape_cast %9 : vector<16xf32> to vector<16x1xf32>
    %cst_5 = arith.constant 3.200000e+01 : f32
    %11 = vector.broadcast %cst_5 : f32 to vector<16x1xf32>
    %12 = arith.divf %10, %11 : vector<16x1xf32>
    %13 = vector.broadcast %5 : vector<16x1xf32> to vector<16x32xf32>
    %14 = arith.subf %0, %13 : vector<16x32xf32>
    %cst_6 = arith.constant 9.99999974E-6 : f32
    %15 = vector.broadcast %cst_6 : f32 to vector<16x1xf32>
    %16 = arith.addf %12, %15 : vector<16x1xf32>
    %17 = math.rsqrt %16 : vector<16x1xf32>
    %18 = vector.broadcast %17 : vector<16x1xf32> to vector<16x32xf32>
    %19 = arith.mulf %14, %18 : vector<16x32xf32>
    %cst_7 = arith.constant dense<0.000000e+00> : vector<256xf32>
    %20 = vector.multi_reduction <add>, %1, %cst_7 [1] : vector<256x16xf32> to vector<256xf32>
    %21 = vector.shape_cast %20 : vector<256xf32> to vector<256x1xf32>
    %cst_8 = arith.constant 1.600000e+01 : f32
    %22 = vector.broadcast %cst_8 : f32 to vector<256x1xf32>
    %23 = arith.divf %21, %22 : vector<256x1xf32>
    %24 = vector.broadcast %23 : vector<256x1xf32> to vector<256x16xf32>
    %25 = arith.subf %1, %24 : vector<256x16xf32>
    %26 = arith.mulf %25, %25 : vector<256x16xf32>
    %cst_9 = arith.constant dense<0.000000e+00> : vector<256xf32>
    %27 = vector.multi_reduction <add>, %26, %cst_9 [1] : vector<256x16xf32> to vector<256xf32>
    %28 = vector.shape_cast %27 : vector<256xf32> to vector<256x1xf32>
    %cst_10 = arith.constant 1.600000e+01 : f32
    %29 = vector.broadcast %cst_10 : f32 to vector<256x1xf32>
    %30 = arith.divf %28, %29 : vector<256x1xf32>
    %31 = vector.broadcast %23 : vector<256x1xf32> to vector<256x16xf32>
    %32 = arith.subf %1, %31 : vector<256x16xf32>
    %cst_11 = arith.constant 9.99999974E-6 : f32
    %33 = vector.broadcast %cst_11 : f32 to vector<256x1xf32>
    %34 = arith.addf %30, %33 : vector<256x1xf32>
    %35 = math.rsqrt %34 : vector<256x1xf32>
    %36 = vector.broadcast %35 : vector<256x1xf32> to vector<256x16xf32>
    %37 = arith.mulf %32, %36 : vector<256x16xf32>
    %c0_12 = arith.constant 0 : index
    %c0_13 = arith.constant 0 : index
    %38 = vector.load %arg3[%c0_12, %c0_13] : memref<32x32xf32, #tpu.memory_space<vmem>>, vector<32x32xf32>
    %cst_14 = arith.constant dense<0.000000e+00> : vector<16x32xf32>
    %39 = tpu.matmul %19, %38, %cst_14 {dimension_numbers = #tpu.dot_dimension_numbers<[1], [0], [0], [1], [0, 0, 1, 1], [], []>} : vector<16x32xf32>, vector<32x32xf32>, vector<16x32xf32> -> vector<16x32xf32>
    %c0_15 = arith.constant 0 : index
    %c0_16 = arith.constant 0 : index
    %40 = vector.load %arg4[%c0_15, %c0_16] : memref<16x64xf32, #tpu.memory_space<vmem>>, vector<16x64xf32>
    %cst_17 = arith.constant dense<0.000000e+00> : vector<256x64xf32>
    %41 = tpu.matmul %37, %40, %cst_17 {dimension_numbers = #tpu.dot_dimension_numbers<[1], [0], [0], [1], [0, 0, 1, 1], [], []>} : vector<256x16xf32>, vector<16x64xf32>, vector<256x64xf32> -> vector<256x64xf32>
    %42 = vector.extract_strided_slice %41 {offsets = [0, 0], sizes = [256, 32], strides = [1, 1]} : vector<256x64xf32> to vector<256x32xf32>
    %43 = vector.extract_strided_slice %41 {offsets = [0, 32], sizes = [256, 32], strides = [1, 1]} : vector<256x64xf32> to vector<256x32xf32>
    %44 = vector.shape_cast %39 : vector<16x32xf32> to vector<2x8x32xf32>
    %45 = vector.shape_cast %42 : vector<256x32xf32> to vector<2x128x32xf32>
    %46 = vector.shape_cast %43 : vector<256x32xf32> to vector<2x128x32xf32>
    "tpu.trace_start"() <{level = 10 : i32, message = "bqd,bkd->bqk"}> : () -> ()
    %cst_18 = arith.constant dense<0.000000e+00> : vector<2x8x128xf32>
    %47 = tpu.matmul %44, %45, %cst_18 {dimension_numbers = #tpu.dot_dimension_numbers<[2], [2], [1], [1], [0, 0, 0, 1, 1, 1], [0], [0]>} : vector<2x8x32xf32>, vector<2x128x32xf32>, vector<2x8x128xf32> -> vector<2x8x128xf32>
    "tpu.trace_stop"() : () -> ()
    %c0_19 = arith.constant 0 : index
    %c0_20 = arith.constant 0 : index
    %c0_21 = arith.constant 0 : index
    %48 = vector.load %arg7[%c0_19, %c0_20, %c0_21] : memref<2x8x128xf32, #tpu.memory_space<vmem>>, vector<2x8x128xf32>
    tpu.vector_store %arg7[%c0_19, %c0_20, %c0_21], %47 {strides = array<i32>} : memref<2x8x128xf32, #tpu.memory_space<vmem>>, vector<2x8x128xf32>,
    %49 = tpu.iota {dimensions = array<i32: 2>} : vector<2x8x128xi32>
    %c8_i32 = arith.constant 8 : i32
    %50 = vector.broadcast %c8_i32 : i32 to vector<2x8x128xi32>
    %51 = arith.cmpi slt, %49, %50 : vector<2x8x128xi32>
    %cst_22 = arith.constant 0xFF800000 : f32
    %52 = vector.broadcast %cst_22 : f32 to vector<2x8x128xf32>
    %53 = arith.select %51, %47, %52 : vector<2x8x128xi1>, vector<2x8x128xf32>
    %cst_23 = arith.constant dense<0xFF800000> : vector<2x8xf32>
    %54 = vector.multi_reduction <maximumf>, %53, %cst_23 [2] : vector<2x8x128xf32> to vector<2x8xf32>
    %55 = vector.shape_cast %54 : vector<2x8xf32> to vector<2x8x1xf32>
    %56 = vector.broadcast %55 : vector<2x8x1xf32> to vector<2x8x128xf32>
    %57 = arith.subf %53, %56 : vector<2x8x128xf32>
    %58 = math.exp %57 : vector<2x8x128xf32>
    %cst_24 = arith.constant dense<0.000000e+00> : vector<2x8xf32>
    %59 = vector.multi_reduction <add>, %58, %cst_24 [2] : vector<2x8x128xf32> to vector<2x8xf32>
    %60 = vector.shape_cast %59 : vector<2x8xf32> to vector<2x8x1xf32>
    %61 = tpu.reciprocal %60 {approx = true} : vector<2x8x1xf32> -> vector<2x8x1xf32>
    %62 = vector.broadcast %61 : vector<2x8x1xf32> to vector<2x8x128xf32>
    %63 = arith.mulf %58, %62 : vector<2x8x128xf32>
    "tpu.trace_start"() <{level = 10 : i32, message = "bqk,bkd->bqd"}> : () -> ()
    %cst_25 = arith.constant dense<0.000000e+00> : vector<2x8x32xf32>
    %64 = tpu.matmul %63, %46, %cst_25 {dimension_numbers = #tpu.dot_dimension_numbers<[2], [1], [1], [2], [0, 0, 0, 1, 1, 2], [0], [0]>} : vector<2x8x128xf32>, vector<2x128x32xf32>, vector<2x8x32xf32> -> vector<2x8x32xf32>
    "tpu.trace_stop"() : () -> ()
    %65 = vector.shape_cast %64 : vector<2x8x32xf32> to vector<16x32xf32>
    %cst_26 = arith.constant 0.000000e+00 : f32
    %66 = vector.broadcast %cst_26 : f32 to vector<16x32xf32>
    %67 = arith.maximumf %65, %66 : vector<16x32xf32>
    %68 = arith.addf %0, %67 : vector<16x32xf32>
    %cst_27 = arith.constant dense<0.000000e+00> : vector<16xf32>
    %69 = vector.multi_reduction <add>, %68, %cst_27 [1] : vector<16x32xf32> to vector<16xf32>
    %70 = vector.shape_cast %69 : vector<16xf32> to vector<16x1xf32>
    %cst_28 = arith.constant 3.200000e+01 : f32
    %71 = vector.broadcast %cst_28 : f32 to vector<16x1xf32>
    %72 = arith.divf %70, %71 : vector<16x1xf32>
    %73 = vector.broadcast %72 : vector<16x1xf32> to vector<16x32xf32>
    %74 = arith.subf %68, %73 : vector<16x32xf32>
    %75 = arith.mulf %74, %74 : vector<16x32xf32>
    %cst_29 = arith.constant dense<0.000000e+00> : vector<16xf32>
    %76 = vector.multi_reduction <add>, %75, %cst_29 [1] : vector<16x32xf32> to vector<16xf32>
    %77 = vector.shape_cast %76 : vector<16xf32> to vector<16x1xf32>
    %cst_30 = arith.constant 3.200000e+01 : f32
    %78 = vector.broadcast %cst_30 : f32 to vector<16x1xf32>
    %79 = arith.divf %77, %78 : vector<16x1xf32>
    %80 = vector.broadcast %72 : vector<16x1xf32> to vector<16x32xf32>
    %81 = arith.subf %68, %80 : vector<16x32xf32>
    %cst_31 = arith.constant 9.99999974E-6 : f32
    %82 = vector.broadcast %cst_31 : f32 to vector<16x1xf32>
    %83 = arith.addf %79, %82 : vector<16x1xf32>
    %84 = math.rsqrt %83 : vector<16x1xf32>
    %85 = vector.broadcast %84 : vector<16x1xf32> to vector<16x32xf32>
    %86 = arith.mulf %81, %85 : vector<16x32xf32>
    %c0_32 = arith.constant 0 : index
    %c0_33 = arith.constant 0 : index
    %87 = vector.load %arg5[%c0_32, %c0_33] : memref<32x128xf32, #tpu.memory_space<vmem>>, vector<32x128xf32>
    %cst_34 = arith.constant dense<0.000000e+00> : vector<16x128xf32>
    %88 = tpu.matmul %86, %87, %cst_34 {dimension_numbers = #tpu.dot_dimension_numbers<[1], [0], [0], [1], [0, 0, 1, 1], [], []>} : vector<16x32xf32>, vector<32x128xf32>, vector<16x128xf32> -> vector<16x128xf32>
    %c0_35 = arith.constant 0 : index
    %c0_36 = arith.constant 0 : index
    %89 = vector.load %arg6[%c0_35, %c0_36] : memref<16x128xf32, #tpu.memory_space<vmem>>, vector<16x128xf32>
    tpu.vector_store %arg6[%c0_35, %c0_36], %88 {strides = array<i32>} : memref<16x128xf32, #tpu.memory_space<vmem>>, vector<16x128xf32>,
    return
  }
  func.func @transform_0(%arg0: i32) -> (i32, i32) {
    %c0_i32 = arith.constant 0 : i32
    %c0_i32_0 = arith.constant 0 : i32
    return %arg0, %c0_i32 : i32, i32
  }
  func.func @transform_1(%arg0: i32) -> (i32, i32) {
    %c0_i32 = arith.constant 0 : i32
    %c0_i32_0 = arith.constant 0 : i32
    return %arg0, %c0_i32 : i32, i32
  }
  func.func @transform_2(%arg0: i32) -> (i32, i32) {
    %c0_i32 = arith.constant 0 : i32
    %c0_i32_0 = arith.constant 0 : i32
    %c0_i32_1 = arith.constant 0 : i32
    return %c0_i32, %c0_i32_0 : i32, i32
  }
  func.func @transform_3(%arg0: i32) -> (i32, i32) {
    %c0_i32 = arith.constant 0 : i32
    %c0_i32_0 = arith.constant 0 : i32
    %c0_i32_1 = arith.constant 0 : i32
    return %c0_i32, %c0_i32_0 : i32, i32
  }
  func.func @transform_4(%arg0: i32) -> (i32, i32) {
    %c0_i32 = arith.constant 0 : i32
    %c0_i32_0 = arith.constant 0 : i32
    %c0_i32_1 = arith.constant 0 : i32
    return %c0_i32, %c0_i32_0 : i32, i32
  }
  func.func @transform_5(%arg0: i32) -> (i32, i32) {
    %c0_i32 = arith.constant 0 : i32
    %c0_i32_0 = arith.constant 0 : i32
    return %arg0, %c0_i32 : i32, i32
  }
  func.func @transform_6(%arg0: i32) -> (i32, i32, i32) {
    %c0_i32 = arith.constant 0 : i32
    %c0_i32_0 = arith.constant 0 : i32
    %c0_i32_1 = arith.constant 0 : i32
    return %arg0, %c0_i32, %c0_i32_0 : i32, i32, i32
  }
}

</mosaic_0001>

<bundles_post_ra>
// kernel: cross_modal_attention.1
= control target key start
LH: loop header
LB: loop body
LE: loop exit
PB: predicated region body
PF: predicated region fallthrough
CT: control target
= control target key end

     0   :  { %vm85_vm0 = vcmask 130048   ;;  %s3108_s0 = inlined_call_operand.vmem [shape: f32[16,32], index: 0, kind: input, shape index: {}]   ;;  %s3109_s1 = inlined_call_operand.vmem [shape: f32[256,16], index: 1, kind: input, shape index: {}]   ;;  %s3110_s2 = inlined_call_operand.vmem [shape: f32[32,32], index: 2, kind: input, shape index: {}]   ;;  %s3111_s3 = inlined_call_operand.vmem [shape: f32[16,64], index: 3, kind: input, shape index: {}]   ;;  %s3112_s4 = inlined_call_operand.vmem [shape: f32[32,128], index: 4, kind: input, shape index: {}]   ;;  %s3113_s5 = inlined_call_operand.vmem [shape: f32[16,128], index: 5, kind: output, shape index: {0}]   ;;  %s3114_s6 = inlined_call_operand.hbm [shape: f32[2,8,128], index: 6, kind: output, shape index: {1}]  }
   0x1   :  { %v2319_v0 = vld [vmem:[%s3109_s1 + $0x10] sm:$0xff]  ;;  %v2324_v1 = vld [vmem:[%s3109_s1] sm:$0xff]  ;;  %v2329_v2 = vld [vmem:[%s3109_s1 + $0x18] sm:$0xff] }
   0x2   :  { %v92_v3 = vsel %vm85_vm0, %v2319_v0, 0.0  ;;  %v86_v4 = vsel %vm85_vm0, %v2324_v1, 0.0  ;;  %v2338_v5 = vld [vmem:[%s3109_s1 + $0x8] sm:$0xff]  ;;  %v95_v6 = vsel %vm85_vm0, %v2329_v2, 0.0  ;;  %v2352_v9 = vld [vmem:[%s3109_s1 + $0x20] sm:$0xff]  ;;  %v2361_v12 = vld [vmem:[%s3109_s1 + $0x38] sm:$0xff] }
   0x3   :  { %93 = vadd.xlane.f32.xlu1 %v92_v3  ;;  %87 = vadd.xlane.f32.xlu0 %v86_v4  ;;  %v89_v7 = vsel %vm85_vm0, %v2338_v5, 0.0  ;;  %v2347_v8 = vld [vmem:[%s3109_s1 + $0x28] sm:$0xff]  ;;  %v98_v11 = vsel %vm85_vm0, %v2352_v9, 0.0  ;;  %v2366_v13 = vld [vmem:[%s3109_s1 + $0x30] sm:$0xff]  ;;  %v107_v14 = vsel %vm85_vm0, %v2361_v12, 0.0 }
   0x4   :  { %v101_v10 = vsel %vm85_vm0, %v2347_v8, 0.0  ;;  %v104_v15 = vsel %vm85_vm0, %v2366_v13, 0.0 }
   0x7   :  { %96 = vadd.xlane.f32.xlu1 %v95_v6  ;;  %90 = vadd.xlane.f32.xlu0 %v89_v7 }
   0xb   :  { %102 = vadd.xlane.f32.xlu1 %v101_v10  ;;  %99 = vadd.xlane.f32.xlu0 %v98_v11 }
   0xc   :  { %12 = vsyncpa [#allocation3], 0  ;;  %v2375_v16 = vld [vmem:[%s3109_s1 + $0x48] sm:$0xff]  ;;  %v2380_v17 = vld [vmem:[%s3109_s1 + $0x40] sm:$0xff]  ;;  %vm57_vm1 = vcmask 261120   ;;  %vm2275_vm3 = vmmov 0  }
   0xd   :  { %v113_v18 = vsel %vm85_vm0, %v2375_v16, 0.0  ;;  %v110_v19 = vsel %vm85_vm0, %v2380_v17, 0.0  ;;  %v2389_v20 = vld [vmem:[%s3109_s1 + $0x58] sm:$0xff]  ;;  %v2394_v21 = vld [vmem:[%s3109_s1 + $0x50] sm:$0xff]  ;;  %v2403_v24 = vld [vmem:[%s3109_s1 + $0x68] sm:$0xff] }
   0xe   :  { %v119_v22 = vsel %vm85_vm0, %v2389_v20, 0.0  ;;  %v116_v23 = vsel %vm85_vm0, %v2394_v21, 0.0  ;;  %v2408_v25 = vld [vmem:[%s3109_s1 + $0x60] sm:$0xff]  ;;  %v125_v26 = vsel %vm85_vm0, %v2403_v24, 0.0  ;;  %v2417_v28 = vld [vmem:[%s3109_s1 + $0x78] sm:$0xff]  ;;  %v2422_v29 = vld [vmem:[%s3109_s1 + $0x70] sm:$0xff] }
   0xf   :  { %108 = vadd.xlane.f32.xlu1 %v107_v14  ;;  %105 = vadd.xlane.f32.xlu0 %v104_v15  ;;  %v122_v27 = vsel %vm85_vm0, %v2408_v25, 0.0  ;;  %v131_v30 = vsel %vm85_vm0, %v2417_v28, 0.0  ;;  %v128_v31 = vsel %vm85_vm0, %v2422_v29, 0.0  ;;  %v2431_v32 = vld [vmem:[%s3109_s1 + $0x88] sm:$0xff]  ;;  %v2436_v33 = vld [vmem:[%s3109_s1 + $0x80] sm:$0xff]  ;;  %v2445_v36 = vld [vmem:[%s3109_s1 + $0x98] sm:$0xff] }
  0x10   :  { %v137_v34 = vsel %vm85_vm0, %v2431_v32, 0.0  ;;  %v134_v35 = vsel %vm85_vm0, %v2436_v33, 0.0  ;;  %v2450_v37 = vld [vmem:[%s3109_s1 + $0x90] sm:$0xff]  ;;  %v143_v38 = vsel %vm85_vm0, %v2445_v36, 0.0  ;;  %v2459_v40 = vld [vmem:[%s3109_s1 + $0xa8] sm:$0xff]  ;;  %v2464_v41 = vld [vmem:[%s3109_s1 + $0xa0] sm:$0xff] }
  0x11   :  { %v140_v39 = vsel %vm85_vm0, %v2450_v37, 0.0  ;;  %v149_v42 = vsel %vm85_vm0, %v2459_v40, 0.0  ;;  %v146_v43 = vsel %vm85_vm0, %v2464_v41, 0.0  ;;  %v2473_v44 = vld [vmem:[%s3109_s1 + $0xb8] sm:$0xff]  ;;  %v2478_v45 = vld [vmem:[%s3109_s1 + $0xb0] sm:$0xff]  ;;  %v2487_v48 = vld [vmem:[%s3109_s1 + $0xc8] sm:$0xff] }
  0x12   :  { %v155_v46 = vsel %vm85_vm0, %v2473_v44, 0.0  ;;  %v152_v47 = vsel %vm85_vm0, %v2478_v45, 0.0  ;;  %v2492_v49 = vld [vmem:[%s3109_s1 + $0xc0] sm:$0xff]  ;;  %v161_v50 = vsel %vm85_vm0, %v2487_v48, 0.0  ;;  %v2501_v52 = vld [vmem:[%s3109_s1 + $0xd8] sm:$0xff]  ;;  %v2506_v53 = vld [vmem:[%s3109_s1 + $0xd0] sm:$0xff] }
  0x13   :  { %114 = vadd.xlane.f32.xlu1 %v113_v18  ;;  %111 = vadd.xlane.f32.xlu0 %v110_v19  ;;  %v158_v51 = vsel %vm85_vm0, %v2492_v49, 0.0  ;;  %v167_v54 = vsel %vm85_vm0, %v2501_v52, 0.0  ;;  %v164_v55 = vsel %vm85_vm0, %v2506_v53, 0.0  ;;  %v2515_v56 = vld [vmem:[%s3109_s1 + $0xe0] sm:$0xff]  ;;  %v2522_v58 = vld [vmem:[%s3109_s1 + $0xe8] sm:$0xff]  ;;  %v2529_v60 = vld [vmem:[%s3109_s1 + $0xf0] sm:$0xff] }
  0x14   :  { %v170_v57 = vsel %vm85_vm0, %v2515_v56, 0.0  ;;  %v173_v59 = vsel %vm85_vm0, %v2522_v58, 0.0  ;;  %v176_v61 = vsel %vm85_vm0, %v2529_v60, 0.0  ;;  %v2536_v62 = vld [vmem:[%s3109_s1 + $0xf8] sm:$0xff]  ;;  %vm2852_vm2 = vmpackc.low %vm57_vm1, %vm57_vm1 }
  0x15   :  { %v179_v63 = vsel %vm85_vm0, %v2536_v62, 0.0 }
  0x17   :  { %120 = vadd.xlane.f32.xlu1 %v119_v22  ;;  %117 = vadd.xlane.f32.xlu0 %v116_v23 }
  0x1b   :  { %126 = vadd.xlane.f32.xlu1 %v125_v26  ;;  %123 = vadd.xlane.f32.xlu0 %v122_v27 }
  0x1f   :  { %132 = vadd.xlane.f32.xlu1 %v131_v30  ;;  %129 = vadd.xlane.f32.xlu0 %v128_v31 }
  0x23   :  { %138 = vadd.xlane.f32.xlu1 %v137_v34  ;;  %135 = vadd.xlane.f32.xlu0 %v134_v35 }
  0x27   :  { %144 = vadd.xlane.f32.xlu1 %v143_v38  ;;  %141 = vadd.xlane.f32.xlu0 %v140_v39 }
  0x2b   :  { %150 = vadd.xlane.f32.xlu1 %v149_v42  ;;  %147 = vadd.xlane.f32.xlu0 %v146_v43 }
  0x2f   :  { %156 = vadd.xlane.f32.xlu1 %v155_v46  ;;  %153 = vadd.xlane.f32.xlu0 %v152_v47 }
  0x33   :  { %162 = vadd.xlane.f32.xlu1 %v161_v50  ;;  %159 = vadd.xlane.f32.xlu0 %v158_v51 }
  0x37   :  { %168 = vadd.xlane.f32.xlu1 %v167_v54  ;;  %165 = vadd.xlane.f32.xlu0 %v164_v55 }
  0x3b   :  { %171 = vadd.xlane.f32.xlu1 %v170_v57 }
  0x3f   :  { %174 = vadd.xlane.f32.xlu1 %v173_v59 }
  0x43   :  { %177 = vadd.xlane.f32.xlu1 %v176_v61 }
  0x47   :  { %180 = vadd.xlane.f32.xlu1 %v179_v63 }
  0x90   :  { %v94_v3 = vpop.xlane.xlu1 %93  ;;  %v88_v4 = vpop.xlane.xlu0 %87 }
  0x91   :  { %v183_v6 = vmul.f32 0.0625, %v88_v4  ;;  %v185_v7 = vmul.f32 0.0625, %v94_v3 }
  0x93   :  { %v2541_v10 = vsub.f32 %v2324_v1, %v183_v6  ;;  %v2546_v22 = vsub.f32 %v2319_v0, %v185_v7 }
  0x94   :  { %v97_v11 = vpop.xlane.xlu1 %96  ;;  %v91_v14 = vpop.xlane.xlu0 %90 }
  0x95   :  { %v186_v15 = vmul.f32 0.0625, %v97_v11  ;;  %v184_v18 = vmul.f32 0.0625, %v91_v14  ;;  %v247_v19 = vmul.f32 %v2541_v10, %v2541_v10  ;;  %v249_v0 = vmul.f32 %v2546_v22, %v2546_v22 }
  0x97   :  { %v2549_v23 = vsub.f32 %v2329_v2, %v186_v15  ;;  %v2552_v26 = vsub.f32 %v2338_v5, %v184_v18  ;;  %v279_v27 = vsel %vm85_vm0, %v247_v19, 0.0  ;;  %v2564_v2 = vld [vmem:[%s3108_s0] sm:$0xff] }
  0x98   :  { %v103_v1 = vpop.xlane.xlu1 %102  ;;  %280 = vadd.xlane.f32.xlu0 %v279_v27  ;;  %v100_v30 = vpop.xlane.xlu0 %99  ;;  %v58_v50 = vsel %vm57_vm1, %v2564_v2, 0.0 }
  0x99   :  { %v250_v31 = vmul.f32 %v2549_v23, %v2549_v23  ;;  %v248_v34 = vmul.f32 %v2552_v26, %v2552_v26  ;;  %v187_v35 = vmul.f32 0.0625, %v100_v30  ;;  %v188_v5 = vmul.f32 0.0625, %v103_v1 }
  0x9b   :  { %v288_v38 = vsel %vm85_vm0, %v250_v31, 0.0  ;;  %v282_v39 = vsel %vm85_vm0, %v248_v34, 0.0  ;;  %v2569_v42 = vsub.f32 %v2352_v9, %v187_v35  ;;  %v2576_v55 = vsub.f32 %v2347_v8, %v188_v5  ;;  %v2591_v8 = vld [vmem:[%s3108_s0 + $0x8] sm:$0xff] }
  0x9c   :  { %289 = vadd.xlane.f32.xlu1 %v288_v38  ;;  %v109_v43 = vpop.xlane.xlu1 %108  ;;  %283 = vadd.xlane.f32.xlu0 %v282_v39  ;;  %v106_v46 = vpop.xlane.xlu0 %105  ;;  %v285_v9 = vsel %vm85_vm0, %v249_v0, 0.0  ;;  %v61_v19 = vsel %vm57_vm1, %v2591_v8, 0.0 }
  0x9d   :  { %v190_v47 = vmul.f32 0.0625, %v109_v43  ;;  %v251_v51 = vmul.f32 %v2569_v42, %v2569_v42  ;;  %v189_v54 = vmul.f32 0.0625, %v106_v46  ;;  %v252_v7 = vmul.f32 %v2576_v55, %v2576_v55 }
  0x9f   :  { %v2579_v57 = vsub.f32 %v2361_v12, %v190_v47  ;;  %v291_v63 = vsel %vm85_vm0, %v251_v51, 0.0  ;;  %v2584_v3 = vsub.f32 %v2366_v13, %v189_v54  ;;  %v294_v30 = vsel %vm85_vm0, %v252_v7, 0.0 }
  0xa0   :  { %v115_v59 = vpop.xlane.xlu1 %114  ;;  %286 = vadd.xlane.f32.xlu0 %v285_v9  ;;  %59 = vadd.xlane.f32.xlu1 %v58_v50  ;;  %v112_v61 = vpop.xlane.xlu0 %111 }
  0xa1   :  { %v254_v4 = vmul.f32 %v2579_v57, %v2579_v57  ;;  %v191_v6 = vmul.f32 0.0625, %v112_v61  ;;  %v192_v11 = vmul.f32 0.0625, %v115_v59  ;;  %v253_v27 = vmul.f32 %v2584_v3, %v2584_v3 }
  0xa3   :  { %v300_v12 = vsel %vm85_vm0, %v254_v4, 0.0  ;;  %v2597_v18 = vsub.f32 %v2380_v17, %v191_v6  ;;  %v2608_v31 = vsub.f32 %v2375_v16, %v192_v11  ;;  %v297_v5 = vsel %vm85_vm0, %v253_v27, 0.0 }
  0xa4   :  { %v121_v14 = vpop.xlane.xlu1 %120  ;;  %292 = vadd.xlane.f32.xlu0 %v291_v63  ;;  %301 = vadd.xlane.f32.xlu1 %v300_v12  ;;  %v118_v13 = vpop.xlane.xlu0 %117 }
  0xa5   :  { %v194_v15 = vmul.f32 0.0625, %v121_v14  ;;  %v193_v35 = vmul.f32 0.0625, %v118_v13  ;;  %v256_v47 = vmul.f32 %v2608_v31, %v2608_v31 }
  0xa7   :  { %v2604_v1 = vsub.f32 %v2389_v20, %v194_v15  ;;  %v255_v20 = vmul.f32 %v2597_v18, %v2597_v18  ;;  %v2620_v46 = vsub.f32 %v2394_v21, %v193_v35  ;;  %v306_v21 = vsel %vm85_vm0, %v256_v47, 0.0 }
  0xa8   :  { %v127_v34 = vpop.xlane.xlu1 %126  ;;  %295 = vadd.xlane.f32.xlu0 %v294_v30  ;;  %62 = vadd.xlane.f32.xlu1 %v61_v19  ;;  %v124_v17 = vpop.xlane.xlu0 %123 }
  0xa9   :  { %v196_v0 = vmul.f32 0.0625, %v127_v34  ;;  %v258_v38 = vmul.f32 %v2604_v1, %v2604_v1  ;;  %v303_v54 = vsel %vm85_vm0, %v255_v20, 0.0  ;;  %v257_v4 = vmul.f32 %v2620_v46, %v2620_v46 }
  0xab   :  { %v2616_v39 = vsub.f32 %v2403_v24, %v196_v0  ;;  %v312_v16 = vsel %vm85_vm0, %v258_v38, 0.0  ;;  %v195_v24 = vmul.f32 0.0625, %v124_v17  ;;  %v309_v19 = vsel %vm85_vm0, %v257_v4, 0.0  ;;  %v588_v17 = vld [vmem:[%s3111_s3] sm:$0xff]  ;;  %v589_v0 = vld [vmem:[%s3111_s3 + $0x8] sm:$0xff] }
  0xac   :  { %v133_v43 = vpop.xlane.xlu1 %132  ;;  %298 = vadd.xlane.f32.xlu0 %v297_v5  ;;  %313 = vadd.xlane.f32.xlu1 %v312_v16  ;;  %v130_v50 = vpop.xlane.xlu0 %129  ;;  %v1957_v5 = vpack.c.bf16 %v589_v0, %v588_v17 }
  0xad   :  { %v198_v51 = vmul.f32 0.0625, %v133_v43  ;;  %v260_v9 = vmul.f32 %v2616_v39, %v2616_v39  ;;  %v2635_v7 = vsub.f32 %v2408_v25, %v195_v24 }
  0xae   :  { %1958 = vmatprep.subr.bf16.mxu1 %v1957_v5 }
  0xaf   :  { %v2628_v59 = vsub.f32 %v2417_v28, %v198_v51  ;;  %v318_v61 = vsel %vm85_vm0, %v260_v9, 0.0  ;;  %v197_v28 = vmul.f32 0.0625, %v130_v50  ;;  %1960 = vmatpush3.bf16.msra.mxu1 %v1957_v5 }
  0xb0   :  { %v139_v63 = vpop.xlane.xlu1 %138  ;;  %304 = vadd.xlane.f32.xlu0 %v303_v54  ;;  %319 = vadd.xlane.f32.xlu1 %v318_v61  ;;  %v136_v6 = vpop.xlane.xlu0 %135 }
  0xb1   :  { %v200_v12 = vmul.f32 0.0625, %v139_v63  ;;  %v262_v11 = vmul.f32 %v2628_v59, %v2628_v59  ;;  %v199_v27 = vmul.f32 0.0625, %v136_v6  ;;  %v2645_v25 = vsub.f32 %v2422_v29, %v197_v28 }
  0xb3   :  { %v2640_v14 = vsub.f32 %v2431_v32, %v200_v12  ;;  %v324_v13 = vsel %vm85_vm0, %v262_v11, 0.0  ;;  %v259_v32 = vmul.f32 %v2635_v7, %v2635_v7  ;;  %v2662_v16 = vsub.f32 %v2436_v33, %v199_v27 }
  0xb4   :  { %v145_v15 = vpop.xlane.xlu1 %144  ;;  %307 = vadd.xlane.f32.xlu0 %v306_v21  ;;  %325 = vadd.xlane.f32.xlu1 %v324_v13  ;;  %v142_v30 = vpop.xlane.xlu0 %141 }
  0xb5   :  { %v202_v34 = vmul.f32 0.0625, %v145_v15  ;;  %v264_v35 = vmul.f32 %v2640_v14, %v2640_v14  ;;  %v201_v43 = vmul.f32 0.0625, %v142_v30  ;;  %v315_v51 = vsel %vm85_vm0, %v259_v32, 0.0 }
  0xb6   :  { %v263_v63 = vmul.f32 %v2662_v16, %v2662_v16 }
  0xb7   :  { %v2658_v38 = vsub.f32 %v2445_v36, %v202_v34  ;;  %v330_v29 = vsel %vm85_vm0, %v264_v35, 0.0  ;;  %v261_v36 = vmul.f32 %v2645_v25, %v2645_v25  ;;  %v2674_v61 = vsub.f32 %v2450_v37, %v201_v43 }
  0xb8   :  { %v151_v20 = vpop.xlane.xlu1 %150  ;;  %310 = vadd.xlane.f32.xlu0 %v309_v19  ;;  %331 = vadd.xlane.f32.xlu1 %v330_v29  ;;  %v148_v47 = vpop.xlane.xlu0 %147  ;;  %v327_v37 = vsel %vm85_vm0, %v263_v63, 0.0 }
  0xb9   :  { %v204_v50 = vmul.f32 0.0625, %v151_v20  ;;  %v266_v54 = vmul.f32 %v2658_v38, %v2658_v38  ;;  %v321_v6 = vsel %vm85_vm0, %v261_v36, 0.0  ;;  %v265_v15 = vmul.f32 %v2674_v61, %v2674_v61 }
  0xbb   :  { %v2670_v9 = vsub.f32 %v2459_v40, %v204_v50  ;;  %v336_v24 = vsel %vm85_vm0, %v266_v54, 0.0  ;;  %v203_v40 = vmul.f32 0.0625, %v148_v47  ;;  %v333_v0 = vsel %vm85_vm0, %v265_v15, 0.0 }
  0xbc   :  { %v157_v33 = vpop.xlane.xlu1 %156  ;;  %316 = vadd.xlane.f32.xlu0 %v315_v51  ;;  %337 = vadd.xlane.f32.xlu1 %v336_v24  ;;  %v154_v21 = vpop.xlane.xlu0 %153 }
  0xbd   :  { %v206_v4 = vmul.f32 0.0625, %v157_v33  ;;  %v268_v12 = vmul.f32 %v2670_v9, %v2670_v9  ;;  %v2689_v30 = vsub.f32 %v2464_v41, %v203_v40 }
  0xbf   :  { %v2682_v11 = vsub.f32 %v2473_v44, %v206_v4  ;;  %v342_v28 = vsel %vm85_vm0, %v268_v12, 0.0  ;;  %v205_v44 = vmul.f32 0.0625, %v154_v21  ;;  %v267_v43 = vmul.f32 %v2689_v30, %v2689_v30 }
  0xc0   :  { %v163_v13 = vpop.xlane.xlu1 %162  ;;  %322 = vadd.xlane.f32.xlu0 %v321_v6  ;;  %343 = vadd.xlane.f32.xlu1 %v342_v28  ;;  %v160_v19 = vpop.xlane.xlu0 %159 }
  0xc1   :  { %v208_v27 = vmul.f32 0.0625, %v163_v13  ;;  %v270_v34 = vmul.f32 %v2682_v11, %v2682_v11  ;;  %v207_v5 = vmul.f32 0.0625, %v160_v19  ;;  %v2699_v20 = vsub.f32 %v2478_v45, %v205_v44 }
  0xc2   :  { %v339_v45 = vsel %vm85_vm0, %v267_v43, 0.0 }
  0xc3   :  { %v2694_v35 = vsub.f32 %v2487_v48, %v208_v27  ;;  %v348_v32 = vsel %vm85_vm0, %v270_v34, 0.0  ;;  %v2710_v54 = vsub.f32 %v2492_v49, %v207_v5  ;;  %v269_v24 = vmul.f32 %v2699_v20, %v2699_v20 }
  0xc4   :  { %v169_v17 = vpop.xlane.xlu1 %168  ;;  %328 = vadd.xlane.f32.xlu0 %v327_v37  ;;  %349 = vadd.xlane.f32.xlu1 %v348_v32  ;;  %v166_v48 = vpop.xlane.xlu0 %165 }
  0xc5   :  { %v210_v29 = vmul.f32 0.0625, %v169_v17  ;;  %v272_v41 = vmul.f32 %v2694_v35, %v2694_v35  ;;  %v209_v33 = vmul.f32 0.0625, %v166_v48  ;;  %v271_v21 = vmul.f32 %v2710_v54, %v2710_v54 }
  0xc6   :  { %v345_v6 = vsel %vm85_vm0, %v269_v24, 0.0 }
  0xc7   :  { %v2706_v47 = vsub.f32 %v2501_v52, %v210_v29  ;;  %v354_v50 = vsel %vm85_vm0, %v272_v41, 0.0  ;;  %v2722_v12 = vsub.f32 %v2506_v53, %v209_v33  ;;  %v351_v13 = vsel %vm85_vm0, %v271_v21, 0.0 }
  0xc8   :  { %v172_v51 = vpop.xlane.xlu1 %171  ;;  %334 = vadd.xlane.f32.xlu0 %v333_v0  ;;  %355 = vadd.xlane.f32.xlu1 %v354_v50 }
  0xc9   :  { %v274_v36 = vmul.f32 %v2706_v47, %v2706_v47  ;;  %v211_v4 = vmul.f32 0.0625, %v172_v51  ;;  %v273_v27 = vmul.f32 %v2722_v12, %v2722_v12 }
  0xcb   :  { %v360_v52 = vsel %vm85_vm0, %v274_v36, 0.0  ;;  %v2729_v37 = vsub.f32 %v2515_v56, %v211_v4  ;;  %v357_v32 = vsel %vm85_vm0, %v273_v27, 0.0 }
  0xcc   :  { %v175_v63 = vpop.xlane.xlu1 %174  ;;  %340 = vadd.xlane.f32.xlu0 %v339_v45  ;;  %361 = vadd.xlane.f32.xlu1 %v360_v52 }
  0xcd   :  { %v212_v49 = vmul.f32 0.0625, %v175_v63  ;;  %v275_v56 = vmul.f32 %v2729_v37, %v2729_v37 }
  0xcf   :  { %v2725_v40 = vsub.f32 %v2522_v58, %v212_v49  ;;  %v363_v0 = vsel %vm85_vm0, %v275_v56, 0.0 }
  0xd0   :  { %v178_v28 = vpop.xlane.xlu1 %177  ;;  %346 = vadd.xlane.f32.xlu0 %v345_v6 }
  0xd1   :  { %v213_v15 = vmul.f32 0.0625, %v178_v28  ;;  %v276_v19 = vmul.f32 %v2725_v40, %v2725_v40 }
  0xd3   :  { %v366_v53 = vsel %vm85_vm0, %v276_v19, 0.0  ;;  %v2737_v58 = vsub.f32 %v2529_v60, %v213_v15 }
  0xd4   :  { %v181_v34 = vpop.xlane.xlu1 %180  ;;  %352 = vadd.xlane.f32.xlu0 %v351_v13  ;;  %367 = vadd.xlane.f32.xlu1 %v366_v53 }
  0xd5   :  { %v214_v44 = vmul.f32 0.0625, %v181_v34  ;;  %v277_v29 = vmul.f32 %v2737_v58, %v2737_v58 }
  0xd7   :  { %v2743_v17 = vsub.f32 %v2536_v62, %v214_v44  ;;  %v369_v41 = vsel %vm85_vm0, %v277_v29, 0.0 }
  0xd8   :  { %358 = vadd.xlane.f32.xlu0 %v357_v32 }
  0xd9   :  { %v278_v5 = vmul.f32 %v2743_v17, %v2743_v17 }
  0xdb   :  { %v372_v60 = vsel %vm85_vm0, %v278_v5, 0.0 }
  0xdc   :  { %364 = vadd.xlane.f32.xlu0 %v363_v0  ;;  %373 = vadd.xlane.f32.xlu1 %v372_v60 }
  0xe0   :  { %370 = vadd.xlane.f32.xlu0 %v369_v41 }
 0x125   :  { %v281_v43 = vpop.xlane.xlu0 %280 }
 0x126   :  { %v375_v48 = vmul.f32 0.0625, %v281_v43 }
 0x128   :  { %v407_v62 = vadd.f32 1e-05, %v375_v48 }
 0x129   :  { %v290_v50 = vpop.xlane.xlu1 %289  ;;  %v284_v51 = vpop.xlane.xlu0 %283 }
 0x12a   :  { %2168 = vrsqrt.f32 %v407_v62  ;;  %v378_v45 = vmul.f32 0.0625, %v290_v50  ;;  %v376_v36 = vmul.f32 0.0625, %v284_v51 }
 0x12c   :  { %v408_v24 = vadd.f32 1e-05, %v376_v36  ;;  %v410_v33 = vadd.f32 1e-05, %v378_v45 }
 0x12d   :  { %v287_v52 = vpop.xlane.xlu0 %286  ;;  %v60_v63 = vpop.xlane.xlu1 %59 }
 0x12e   :  { %v377_v21 = vmul.f32 0.0625, %v287_v52  ;;  %v65_v4 = vmul.f32 0.03125, %v60_v63  ;;  %2170 = vrsqrt.f32 %v408_v24 }
 0x12f   :  { %2172 = vrsqrt.f32 %v410_v33 }
 0x130   :  { %v409_v49 = vadd.f32 1e-05, %v377_v21  ;;  %v2753_v6 = vsub.f32 %v2564_v2, %v65_v4 }
 0x131   :  { %v293_v28 = vpop.xlane.xlu0 %292  ;;  %v302_v13 = vpop.xlane.xlu1 %301 }
 0x132   :  { %2174 = vrsqrt.f32 %v409_v49  ;;  %v379_v15 = vmul.f32 0.0625, %v293_v28  ;;  %v69_v19 = vmul.f32 %v2753_v6, %v2753_v6  ;;  %v382_v44 = vmul.f32 0.0625, %v302_v13 }
 0x134   :  { %v2169_v27 = vpop.eup %2168  ;;  %v411_v53 = vadd.f32 1e-05, %v379_v15  ;;  %v71_v34 = vsel %vm57_vm1, %v69_v19, 0.0  ;;  %v414_v43 = vadd.f32 1e-05, %v382_v44 }
 0x135   :  { %v296_v32 = vpop.xlane.xlu0 %295  ;;  %72 = vadd.xlane.f32.xlu0 %v71_v34  ;;  %v63_v56 = vpop.xlane.xlu1 %62  ;;  %v471_v0 = vmul.f32 %v2169_v27, %v2541_v10 }
 0x136   :  { %2176 = vrsqrt.f32 %v411_v53  ;;  %v380_v2 = vmul.f32 0.0625, %v296_v32  ;;  %v66_v5 = vmul.f32 0.03125, %v63_v56 }
 0x137   :  { %1750 = vmatprep.mubr.msk.f32.mxu1 %vm85_vm0, %v471_v0 }
 0x138   :  { %v412_v29 = vadd.f32 1e-05, %v380_v2  ;;  %v2761_v60 = vsub.f32 %v2591_v8, %v66_v5  ;;  %v2171_v41 = vpop.eup %2170 }
 0x139   :  { %v299_v48 = vpop.xlane.xlu0 %298  ;;  %v314_v62 = vpop.xlane.xlu1 %313  ;;  %v472_v51 = vmul.f32 %v2171_v41, %v2552_v26 }
 0x13a   :  { %2178 = vrsqrt.f32 %v412_v29  ;;  %v381_v50 = vmul.f32 0.0625, %v299_v48  ;;  %v2173_v45 = vpop.eup %2172  ;;  %v70_v10 = vmul.f32 %v2761_v60, %v2761_v60  ;;  %v386_v28 = vmul.f32 0.0625, %v314_v62 }
 0x13b   :  { %1751 = vmatmul.mubr.msk.f32.vlgmr.msra.gmra.mrb[0].mxu1 %vm85_vm0, %v472_v51  ;;  %2180 = vrsqrt.f32 %v414_v43  ;;  %v474_v26 = vmul.f32 %v2173_v45, %v2549_v23 }
 0x13c   :  { %v2175_v36 = vpop.eup %2174  ;;  %v413_v24 = vadd.f32 1e-05, %v381_v50  ;;  %v74_v8 = vsel %vm57_vm1, %v70_v10, 0.0  ;;  %v418_v34 = vadd.f32 1e-05, %v386_v28 }
 0x13d   :  { %v305_v33 = vpop.xlane.xlu0 %304  ;;  %v320_v52 = vpop.xlane.xlu1 %319  ;;  %v473_v63 = vmul.f32 %v2175_v36, %v2546_v22  ;;  %75 = vadd.xlane.f32.xlu1 %v74_v8 }
 0x13e   :  { %2182 = vrsqrt.f32 %v413_v24  ;;  %v383_v21 = vmul.f32 0.0625, %v305_v33  ;;  %v388_v44 = vmul.f32 0.0625, %v320_v52 }
 0x13f   :  { %1753 = vmatprep.mubr.msk.f32.mxu1 %vm85_vm0, %v473_v63 }
 0x140   :  { %v2177_v4 = vpop.eup %2176  ;;  %v415_v49 = vadd.f32 1e-05, %v383_v21  ;;  %1754 = vmatmul.mubr.msk.f32.gmra.mrb[2].mxu1 %vm85_vm0, %v474_v26  ;;  %v503_v21 = vld [vmem:[%s3110_s2] sm:$0xff]  ;;  %v504_v26 = vld [vmem:[%s3110_s2 + $0x8] sm:$0xff] }
 0x141   :  { %v308_v13 = vpop.xlane.xlu0 %307  ;;  %v326_v15 = vpop.xlane.xlu1 %325  ;;  %v475_v19 = vmul.f32 %v2177_v4, %v2569_v42  ;;  %v420_v42 = vadd.f32 1e-05, %v388_v44  ;;  %v1949_v28 = vpack.c.bf16 %v504_v26, %v503_v21 }
 0x142   :  { %2184 = vrsqrt.f32 %v415_v49  ;;  %v384_v27 = vmul.f32 0.0625, %v308_v13  ;;  %v390_v41 = vmul.f32 0.0625, %v326_v15 }
 0x143   :  { %1756 = vmatprep.mubr.msk.f32.mxu1 %vm85_vm0, %v475_v19  ;;  %1950 = vmatprep.subr.bf16.mxu0 %v1949_v28 }
 0x144   :  { %v2179_v22 = vpop.eup %2178  ;;  %v416_v53 = vadd.f32 1e-05, %v384_v27  ;;  %v422_v36 = vadd.f32 1e-05, %v390_v41  ;;  %1952 = vmatpush3.bf16.msra.mxu0 %v1949_v28 }
 0x145   :  { %v311_v23 = vpop.xlane.xlu0 %310  ;;  %v332_v32 = vpop.xlane.xlu1 %331  ;;  %v476_v56 = vmul.f32 %v2179_v22, %v2576_v55 }
 0x146   :  { %2186 = vrsqrt.f32 %v416_v53  ;;  %v385_v0 = vmul.f32 0.0625, %v311_v23  ;;  %v2181_v2 = vpop.eup %2180  ;;  %v392_v45 = vmul.f32 0.0625, %v332_v32  ;;  %v505_v53 = vld [vmem:[%s3110_s2 + $0x10] sm:$0xff] }
 0x147   :  { %1757 = vmatmul.mubr.msk.f32.gmra.mrb[4].mxu1 %vm85_vm0, %v476_v56  ;;  %2188 = vrsqrt.f32 %v418_v34  ;;  %v478_v51 = vmul.f32 %v2181_v2, %v2579_v57 }
 0x148   :  { %v2183_v5 = vpop.eup %2182  ;;  %v417_v29 = vadd.f32 1e-05, %v385_v0  ;;  %v424_v63 = vadd.f32 1e-05, %v392_v45 }
 0x149   :  { %v317_v43 = vpop.xlane.xlu0 %316  ;;  %v338_v48 = vpop.xlane.xlu1 %337  ;;  %v477_v62 = vmul.f32 %v2183_v5, %v2584_v3 }
 0x14a   :  { %2190 = vrsqrt.f32 %v417_v29  ;;  %v387_v50 = vmul.f32 0.0625, %v317_v43  ;;  %v394_v4 = vmul.f32 0.0625, %v338_v48 }
 0x14b   :  { %1759 = vmatprep.mubr.msk.f32.mxu1 %vm85_vm0, %v477_v62  ;;  %2192 = vrsqrt.f32 %v420_v42 }
 0x14c   :  { %v2185_v55 = vpop.eup %2184  ;;  %v419_v10 = vadd.f32 1e-05, %v387_v50  ;;  %1760 = vmatmul.mubr.msk.f32.gmra.mrb[6].mxu1 %vm85_vm0, %v478_v51  ;;  %v426_v34 = vadd.f32 1e-05, %v394_v4 }
 0x14d   :  { %v323_v24 = vpop.xlane.xlu0 %322  ;;  %v344_v33 = vpop.xlane.xlu1 %343  ;;  %v479_v8 = vmul.f32 %v2185_v55, %v2597_v18 }
 0x14e   :  { %2194 = vrsqrt.f32 %v419_v10  ;;  %v389_v52 = vmul.f32 0.0625, %v323_v24  ;;  %v396_v44 = vmul.f32 0.0625, %v344_v33 }
 0x14f   :  { %1762 = vmatprep.mubr.msk.f32.mxu1 %vm85_vm0, %v479_v8  ;;  %2196 = vrsqrt.f32 %v422_v36 }
 0x150   :  { %v2187_v3 = vpop.eup %2186  ;;  %v421_v57 = vadd.f32 1e-05, %v389_v52  ;;  %v428_v43 = vadd.f32 1e-05, %v396_v44 }
 0x151   :  { %v329_v49 = vpop.xlane.xlu0 %328  ;;  %v480_v18 = vmul.f32 %v2187_v3, %v2608_v31  ;;  %v350_v15 = vpop.xlane.xlu1 %349  ;;  %v506_v31 = vld [vmem:[%s3110_s2 + $0x18] sm:$0xff]  ;;  %s2277_s2 = smov 96  }
 0x152   :  { %2198 = vrsqrt.f32 %v421_v57  ;;  %v391_v13 = vmul.f32 0.0625, %v329_v49  ;;  %v2189_v19 = vpop.eup %2188  ;;  %v1953_v56 = vpack.c.bf16 %v506_v31, %v505_v53  ;;  %v398_v48 = vmul.f32 0.0625, %v350_v15 }
 0x153   :  { %1763 = vmatmul.mubr.msk.f32.gmra.mrb[8].mxu1 %vm85_vm0, %v480_v18  ;;  %2200 = vrsqrt.f32 %v424_v63  ;;  %v482_v2 = vmul.f32 %v2189_v19, %v2604_v1 }
 0x154   :  { %v2191_v27 = vpop.eup %2190  ;;  %v423_v22 = vadd.f32 1e-05, %v391_v13  ;;  %1954 = vmatprep.subr.bf16.mxu0 %v1953_v56  ;;  %v430_v10 = vadd.f32 1e-05, %v398_v48 }
 0x155   :  { %v335_v23 = vpop.xlane.xlu0 %334  ;;  %v481_v32 = vmul.f32 %v2191_v27, %v2620_v46  ;;  %v2193_v5 = vpop.eup %2192  ;;  %1956 = vmatpush3.bf16.msra.mxu0 %v1953_v56 }
 0x156   :  { %2202 = vrsqrt.f32 %v423_v22  ;;  %v393_v0 = vmul.f32 0.0625, %v335_v23  ;;  %v356_v41 = vpop.xlane.xlu1 %355  ;;  %v484_v1 = vmul.f32 %v2193_v5, %v2616_v39 }
 0x157   :  { %1765 = vmatprep.mubr.msk.f32.mxu1 %vm85_vm0, %v481_v32  ;;  %2204 = vrsqrt.f32 %v426_v34  ;;  %v400_v36 = vmul.f32 0.0625, %v356_v41 }
 0x158   :  { %v2195_v29 = vpop.eup %2194  ;;  %v425_v42 = vadd.f32 1e-05, %v393_v0  ;;  %1766 = vmatmul.mubr.msk.f32.gmra.mrb[10].mxu1 %vm85_vm0, %v482_v2 }
 0x159   :  { %v341_v62 = vpop.xlane.xlu0 %340  ;;  %v483_v46 = vmul.f32 %v2195_v29, %v2635_v7  ;;  %v2197_v51 = vpop.eup %2196  ;;  %v432_v57 = vadd.f32 1e-05, %v400_v36 }
 0x15a   :  { %2206 = vrsqrt.f32 %v425_v42  ;;  %v395_v50 = vmul.f32 0.0625, %v341_v62  ;;  %v362_v7 = vpop.xlane.xlu1 %361  ;;  %v486_v3 = vmul.f32 %v2197_v51, %v2628_v59 }
 0x15b   :  { %1768 = vmatprep.mubr.msk.f32.mxu1 %vm85_vm0, %v483_v46  ;;  %2208 = vrsqrt.f32 %v428_v43  ;;  %v402_v21 = vmul.f32 0.0625, %v362_v7 }
 0x15c   :  { %v2199_v55 = vpop.eup %2198  ;;  %v427_v45 = vadd.f32 1e-05, %v395_v50  ;;  %1769 = vmatmul.mubr.msk.f32.gmra.mrb[12].mxu1 %vm85_vm0, %v484_v1 }
 0x15d   :  { %v347_v24 = vpop.xlane.xlu0 %346  ;;  %v485_v33 = vmul.f32 %v2199_v55, %v2645_v25  ;;  %v2201_v8 = vpop.eup %2200  ;;  %v434_v15 = vadd.f32 1e-05, %v402_v21 }
 0x15e   :  { %2210 = vrsqrt.f32 %v427_v45  ;;  %v397_v52 = vmul.f32 0.0625, %v347_v24  ;;  %v488_v18 = vmul.f32 %v2201_v8, %v2640_v14 }
 0x15f   :  { %1771 = vmatprep.mubr.msk.f32.mxu1 %vm85_vm0, %v485_v33  ;;  %2212 = vrsqrt.f32 %v430_v10  ;;  %v2274_v33 = vmov 0.0|0.0  }
 0x160   :  { %v2203_v39 = vpop.eup %2202  ;;  %v429_v63 = vadd.f32 1e-05, %v397_v52  ;;  %1772 = vmatmul.mubr.msk.f32.gmra.mrb[14].mxu1 %vm85_vm0, %v486_v3  ;;  %1961 = vmatprep.subr.bf16.mxu1 %v2274_v33 }
 0x161   :  { %v353_v26 = vpop.xlane.xlu0 %352  ;;  %v487_v4 = vmul.f32 %v2203_v39, %v2662_v16  ;;  %v368_v49 = vpop.xlane.xlu1 %367  ;;  %1993 = vmatprep.subr.bf16.mxu0 %v2274_v33 }
 0x162   :  { %2214 = vrsqrt.f32 %v429_v63  ;;  %v399_v25 = vmul.f32 0.0625, %v353_v26  ;;  %v2205_v28 = vpop.eup %2204  ;;  %v404_v19 = vmul.f32 0.0625, %v368_v49  ;;  %v1155_v26 = vlaneseq }
 0x163   :  { %1774 = vmatprep.mubr.msk.f32.mxu1 %vm85_vm0, %v487_v4  ;;  %2216 = vrsqrt.f32 %v432_v57  ;;  %v490_v53 = vmul.f32 %v2205_v28, %v2658_v38 }
 0x164   :  { %v2207_v59 = vpop.eup %2206  ;;  %v431_v13 = vadd.f32 1e-05, %v399_v25  ;;  %1775 = vmatmul.mubr.msk.f32.gmra.mrb[16].mxu1 %vm85_vm0, %v488_v18  ;;  %v436_v44 = vadd.f32 1e-05, %v404_v19 }
 0x165   :  { %v359_v27 = vpop.xlane.xlu0 %358  ;;  %v489_v22 = vmul.f32 %v2207_v59, %v2674_v61  ;;  %v2209_v31 = vpop.eup %2208 }
 0x166   :  { %2218 = vrsqrt.f32 %v431_v13  ;;  %v401_v16 = vmul.f32 0.0625, %v359_v27  ;;  %v492_v2 = vmul.f32 %v2209_v31, %v2670_v9 }
 0x167   :  { %1777 = vmatprep.mubr.msk.f32.mxu1 %vm85_vm0, %v489_v22  ;;  %2220 = vrsqrt.f32 %v434_v15 }
 0x168   :  { %v2211_v14 = vpop.eup %2210  ;;  %v433_v34 = vadd.f32 1e-05, %v401_v16  ;;  %1778 = vmatmul.mubr.msk.f32.gmra.mrb[18].mxu1 %vm85_vm0, %v490_v53 }
 0x169   :  { %v365_v23 = vpop.xlane.xlu0 %364  ;;  %v374_v32 = vpop.xlane.xlu1 %373  ;;  %v491_v56 = vmul.f32 %v2211_v14, %v2689_v30 }
 0x16a   :  { %2222 = vrsqrt.f32 %v433_v34  ;;  %v403_v0 = vmul.f32 0.0625, %v365_v23  ;;  %v406_v61 = vmul.f32 0.0625, %v374_v32  ;;  %v2213_v5 = vpop.eup %2212 }
 0x16b   :  { %1780 = vmatprep.mubr.msk.f32.mxu1 %vm85_vm0, %v491_v56  ;;  %2224 = vrsqrt.f32 %v436_v44  ;;  %v494_v30 = vmul.f32 %v2213_v5, %v2682_v11 }
 0x16c   :  { %v2215_v38 = vpop.eup %2214  ;;  %v435_v29 = vadd.f32 1e-05, %v403_v0  ;;  %1781 = vmatmul.mubr.msk.f32.gmra.mrb[20].mxu1 %vm85_vm0, %v492_v2  ;;  %v438_v42 = vadd.f32 1e-05, %v406_v61  ;;  %v2276_v2 = vmov 0.0  }
 0x16d   :  { %v371_v41 = vpop.xlane.xlu0 %370  ;;  %v493_v43 = vmul.f32 %v2215_v38, %v2699_v20  ;;  %v2217_v62 = vpop.eup %2216 }
 0x16e   :  { %2226 = vrsqrt.f32 %v435_v29  ;;  %v405_v48 = vmul.f32 0.0625, %v371_v41  ;;  %v496_v1 = vmul.f32 %v2217_v62, %v2694_v35 }
 0x16f   :  { %1783 = vmatprep.mubr.msk.f32.mxu1 %vm85_vm0, %v493_v43  ;;  %2228 = vrsqrt.f32 %v438_v42 }
 0x170   :  { %v2219_v9 = vpop.eup %2218  ;;  %v437_v46 = vadd.f32 1e-05, %v405_v48  ;;  %1784 = vmatmul.mubr.msk.f32.gmra.mrb[22].mxu1 %vm85_vm0, %v494_v30 }
 0x171   :  { %v495_v50 = vmul.f32 %v2219_v9, %v2710_v54  ;;  %v2221_v51 = vpop.eup %2220 }
 0x172   :  { %2230 = vrsqrt.f32 %v437_v46  ;;  %v498_v55 = vmul.f32 %v2221_v51, %v2706_v47 }
 0x173   :  { %1786 = vmatprep.mubr.msk.f32.mxu1 %vm85_vm0, %v495_v50 }
 0x174   :  { %v2223_v20 = vpop.eup %2222  ;;  %1787 = vmatmul.mubr.msk.f32.gmra.mrb[24].mxu1 %vm85_vm0, %v496_v1 }
 0x175   :  { %v497_v11 = vmul.f32 %v2223_v20, %v2722_v12  ;;  %v2225_v45 = vpop.eup %2224 }
 0x176   :  { %v500_v35 = vmul.f32 %v2225_v45, %v2725_v40 }
 0x177   :  { %1789 = vmatprep.mubr.msk.f32.mxu1 %vm85_vm0, %v497_v11 }
 0x178   :  { %v2227_v10 = vpop.eup %2226  ;;  %1790 = vmatmul.mubr.msk.f32.gmra.mrb[26].mxu1 %vm85_vm0, %v498_v55 }
 0x179   :  { %v499_v54 = vmul.f32 %v2227_v10, %v2729_v37  ;;  %v2229_v36 = vpop.eup %2228 }
 0x17a   :  { %v502_v47 = vmul.f32 %v2229_v36, %v2743_v17 }
 0x17b   :  { %1792 = vmatprep.mubr.msk.f32.mxu1 %vm85_vm0, %v499_v54 }
 0x17c   :  { %v2231_v24 = vpop.eup %2230  ;;  %1793 = vmatmul.mubr.msk.f32.gmra.mrb[28].mxu1 %vm85_vm0, %v500_v35 }
 0x17d   :  { %v501_v12 = vmul.f32 %v2231_v24, %v2737_v58 }
 0x17f   :  { %1795 = vmatprep.mubr.msk.f32.mxu1 %vm85_vm0, %v501_v12 }
 0x180   :  { %1796 = vmatmul.mubr.msk.f32.gmra.mrb[30].mxu1 %vm85_vm0, %v502_v47 }
 0x181   :  { %1830 = vmatprep.mubr.msk.f32.mxu1 %vm2275_vm3, %v2276_v2 }
 0x1c2   :  { %v73_v40 = vpop.xlane.xlu0 %72 }
 0x1c3   :  { %v77_v37 = vmul.f32 0.03125, %v73_v40 }
 0x1c5   :  { %v79_v8 = vadd.f32 1e-05, %v77_v37 }
 0x1c7   :  { %2232 = vrsqrt.f32 %v79_v8 }
 0x1ca   :  { %v76_v7 = vpop.xlane.xlu1 %75 }
 0x1cb   :  { %v78_v52 = vmul.f32 0.03125, %v76_v7 }
 0x1cd   :  { %v80_v3 = vadd.f32 1e-05, %v78_v52 }
 0x1cf   :  { %2234 = vrsqrt.f32 %v80_v3 }
 0x1d1   :  { %v2233_v58 = vpop.eup %2232 }
 0x1d2   :  { %v83_v17 = vmul.f32 %v2233_v58, %v2753_v6 }
 0x1d4   :  { %1743 = vmatprep.mubr.msk.f32.mxu0 %vm57_vm1, %v83_v17 }
 0x1d9   :  { %v2235_v39 = vpop.eup %2234 }
 0x1da   :  { %v84_v63 = vmul.f32 %v2235_v39, %v2761_v60 }
 0x1dc   :  { %1744 = vmatmul.mubr.msk.f32.vlgmr.msra.gmra.mrb[0].mxu0 %vm57_vm1, %v84_v63 }
 0x1dd   :  { %1865 = vmatprep.mubr.msk.f32.mxu0 %vm2275_vm3, %v2276_v2 }
 0x20e   :  { %v2846_v57 = vpop.f32.mrb[0].mxu1 }
 0x20f   :  { %v2848_v21 = vpop.f32.mrb[1].mxu1 }
 0x210   :  { %v2088_v6 = vpack.i.bf16 %v2846_v57, %v2848_v21  ;;  %v1962_v4 = vpack.c.bf16 %v2846_v57, %v2848_v21 }
 0x212   :  { %1964 = vmatpush3.bf16.xpose.msk.msra.mxu1 %vm2852_vm2, %v1962_v4 }
 0x213   :  { %v1755_v60 = vpop.f32.mrb[2].mxu1  ;;  %1965 = vmatprep.subr.bf16.mxu1 %v2274_v33 }
 0x214   :  { %v762_v25 = vpop.f32.mrb[3].mxu1 }
 0x215   :  { %v2098_v49 = vpack.i.bf16 %v1755_v60, %v762_v25  ;;  %v1966_v18 = vpack.c.bf16 %v1755_v60, %v762_v25 }
 0x21a   :  { %v2863_v28 = vpop.f32.mrb[4].mxu1  ;;  %1968 = vmatpush3.bf16.xpose.msk.msra.mxu1 %vm2852_vm2, %v1966_v18 }
 0x21b   :  { %v2867_v59 = vpop.f32.mrb[5].mxu1  ;;  %1969 = vmatprep.subr.bf16.mxu1 %v2274_v33 }
 0x21c   :  { %v2108_v13 = vpack.i.bf16 %v2863_v28, %v2867_v59  ;;  %v1970_v15 = vpack.c.bf16 %v2863_v28, %v2867_v59 }
 0x21f   :  { %v2874_v19 = vpop.f32.mrb[6].mxu1 }
 0x220   :  { %v2876_v27 = vpop.f32.mrb[7].mxu1 }
 0x221   :  { %v2118_v22 = vpack.i.bf16 %v2874_v19, %v2876_v27  ;;  %v1974_v16 = vpack.c.bf16 %v2874_v19, %v2876_v27 }
 0x222   :  { %1972 = vmatpush3.bf16.xpose.msk.msra.mxu1 %vm2852_vm2, %v1970_v15 }
 0x223   :  { %1973 = vmatprep.subr.bf16.mxu1 %v2274_v33 }
 0x226   :  { %v2885_v53 = vpop.f32.mrb[8].mxu1 }
 0x227   :  { %v2887_v31 = vpop.f32.mrb[9].mxu1 }
 0x228   :  { %v2128_v14 = vpack.i.bf16 %v2885_v53, %v2887_v31  ;;  %v1978_v34 = vpack.c.bf16 %v2885_v53, %v2887_v31 }
 0x22a   :  { %1976 = vmatpush3.bf16.xpose.msk.msra.mxu1 %vm2852_vm2, %v1974_v16 }
 0x22b   :  { %v2895_v44 = vpop.f32.mrb[10].mxu1  ;;  %1977 = vmatprep.subr.bf16.mxu1 %v2274_v33 }
 0x22c   :  { %v2897_v23 = vpop.f32.mrb[11].mxu1 }
 0x22d   :  { %v2138_v32 = vpack.i.bf16 %v2895_v44, %v2897_v23  ;;  %v1982_v56 = vpack.c.bf16 %v2895_v44, %v2897_v23 }
 0x22f   :  { %v2904_v0 = vpop.f32.mrb[12].mxu1 }
 0x230   :  { %v2906_v61 = vpop.f32.mrb[13].mxu1 }
 0x231   :  { %v2148_v5 = vpack.i.bf16 %v2904_v0, %v2906_v61  ;;  %v1986_v38 = vpack.c.bf16 %v2904_v0, %v2906_v61 }
 0x232   :  { %1980 = vmatpush3.bf16.xpose.msk.msra.mxu1 %vm2852_vm2, %v1978_v34 }
 0x233   :  { %v2918_v29 = vpop.f32.mrb[14].mxu1  ;;  %1981 = vmatprep.subr.bf16.mxu1 %v2274_v33 }
 0x234   :  { %v2920_v42 = vpop.f32.mrb[15].mxu1 }
 0x235   :  { %v2158_v41 = vpack.i.bf16 %v2918_v29, %v2920_v42  ;;  %v1990_v43 = vpack.c.bf16 %v2918_v29, %v2920_v42 }
 0x237   :  { %v1776_v48 = vpop.f32.mrb[16].mxu1 }
 0x238   :  { %v832_v30 = vpop.f32.mrb[17].mxu1 }
 0x239   :  { %v2093_v62 = vpack.i.bf16 %v1776_v48, %v832_v30  ;;  %v1994_v9 = vpack.c.bf16 %v1776_v48, %v832_v30 }
 0x23a   :  { %1984 = vmatpush3.bf16.xpose.msk.msra.mxu1 %vm2852_vm2, %v1982_v56 }
 0x23b   :  { %2094 = vrot.lane.b32.xlu1 %v2093_v62, %s2277_s2  ;;  %v2930_v46 = vpop.f32.mrb[18].mxu1  ;;  %1996 = vmatpush3.bf16.xpose.msk.msra.mxu0 %vm2852_vm2, %v1994_v9 }
 0x23c   :  { %v2934_v50 = vpop.f32.mrb[19].mxu1  ;;  %1985 = vmatprep.subr.bf16.mxu1 %v2274_v33  ;;  %1997 = vmatprep.subr.bf16.mxu0 %v2274_v33 }
 0x23d   :  { %v2103_v1 = vpack.i.bf16 %v2930_v46, %v2934_v50  ;;  %v1998_v51 = vpack.c.bf16 %v2930_v46, %v2934_v50 }
 0x23f   :  { %2099 = vrot.lane.b32.xlu1 %v2098_v49, %s2277_s2  ;;  %v2943_v20 = vpop.f32.mrb[20].mxu1 }
 0x240   :  { %v2945_v11 = vpop.f32.mrb[21].mxu1 }
 0x241   :  { %v2113_v55 = vpack.i.bf16 %v2943_v20, %v2945_v11  ;;  %v2002_v45 = vpack.c.bf16 %v2943_v20, %v2945_v11 }
 0x242   :  { %1988 = vmatpush3.bf16.xpose.msk.msra.mxu1 %vm2852_vm2, %v1986_v38  ;;  %v1156_v38 = vand.u32 127, %v1155_v26 }
 0x243   :  { %v2953_v10 = vpop.f32.mrb[22].mxu1  ;;  %2000 = vmatpush3.bf16.xpose.msk.msra.mxu0 %vm2852_vm2, %v1998_v51  ;;  %1989 = vmatprep.subr.bf16.mxu1 %v2274_v33 }
 0x244   :  { %v2957_v54 = vpop.f32.mrb[23].mxu1  ;;  %2001 = vmatprep.subr.bf16.mxu0 %v2274_v33  ;;  %vm1157_vm4 = vcmp.lt.s32.totalorder %v1156_v38, 8 }
 0x245   :  { %v2123_v35 = vpack.i.bf16 %v2953_v10, %v2957_v54  ;;  %v2006_v36 = vpack.c.bf16 %v2953_v10, %v2957_v54 }
 0x247   :  { %v1788_v24 = vpop.f32.mrb[24].mxu1 }
 0x248   :  { %v872_v12 = vpop.f32.mrb[25].mxu1 }
 0x249   :  { %v2133_v47 = vpack.i.bf16 %v1788_v24, %v872_v12  ;;  %v2010_v40 = vpack.c.bf16 %v1788_v24, %v872_v12 }
 0x24a   :  { %1992 = vmatpush3.bf16.xpose.msk.msra.mxu1 %vm2852_vm2, %v1990_v43 }
 0x24b   :  { %v1791_v37 = vpop.f32.mrb[26].mxu1  ;;  %2004 = vmatpush3.bf16.xpose.msk.msra.mxu0 %vm2852_vm2, %v2002_v45  ;;  %2025 = vmatprep.subr.bf16.mxu1 %v2274_v33 }
 0x24c   :  { %v882_v8 = vpop.f32.mrb[27].mxu1  ;;  %2005 = vmatprep.subr.bf16.mxu0 %v2274_v33 }
 0x24d   :  { %v2143_v7 = vpack.i.bf16 %v1791_v37, %v882_v8  ;;  %v2014_v52 = vpack.c.bf16 %v1791_v37, %v882_v8 }
 0x24f   :  { %v1794_v3 = vpop.f32.mrb[28].mxu1 }
 0x250   :  { %v892_v58 = vpop.f32.mrb[29].mxu1 }
 0x251   :  { %v2153_v17 = vpack.i.bf16 %v1794_v3, %v892_v58  ;;  %v2018_v39 = vpack.c.bf16 %v1794_v3, %v892_v58 }
 0x253   :  { %v2971_v63 = vpop.f32.mrb[30].mxu1  ;;  %2008 = vmatpush3.bf16.xpose.msk.msra.mxu0 %vm2852_vm2, %v2006_v36 }
 0x254   :  { %v2975_v4 = vpop.f32.mrb[31].mxu1  ;;  %2009 = vmatprep.subr.bf16.mxu0 %v2274_v33 }
 0x255   :  { %v2163_v60 = vpack.i.bf16 %v2971_v63, %v2975_v4  ;;  %v2022_v25 = vpack.c.bf16 %v2971_v63, %v2975_v4 }
 0x25b   :  { %2012 = vmatpush3.bf16.xpose.msk.msra.mxu0 %vm2852_vm2, %v2010_v40 }
 0x25c   :  { %2013 = vmatprep.subr.bf16.mxu0 %v2274_v33 }
 0x263   :  { %2016 = vmatpush3.bf16.xpose.msk.msra.mxu0 %vm2852_vm2, %v2014_v52 }
 0x264   :  { %2017 = vmatprep.subr.bf16.mxu0 %v2274_v33 }
 0x26b   :  { %2020 = vmatpush3.bf16.xpose.msk.msra.mxu0 %vm2852_vm2, %v2018_v39 }
 0x26c   :  { %2021 = vmatprep.subr.bf16.mxu0 %v2274_v33 }
 0x273   :  { %2024 = vmatpush3.bf16.xpose.msk.msra.mxu0 %vm2852_vm2, %v2022_v25 }
 0x274   :  { %2049 = vmatprep.subr.bf16.mxu0 %v2274_v33 }
 0x2ad   :  { %v2095_v49 = vpop.permute.xlu1 %2094 }
 0x2ae   :  { %v2097_v18 = vunpack.i.h.bf16 %v2095_v49  ;;  %v2096_v15 = vunpack.i.l.bf16 %v2095_v49 }
 0x2af   :  { %v1745_v34 = vpop.f32.mrb[0].mxu0 }
 0x2b0   :  { %v2050_v16 = vpack.c.bf16 %v2097_v18, %v2096_v15  ;;  %v579_v56 = vpop.f32.mrb[1].mxu0  ;;  %1866 = vmatmul.mubr.msk.f32.vlgmr.msra.gmra.mrb[2].mxu0 %vm57_vm1, %v1745_v34 }
 0x2b1   :  { %1831 = vmatmul.mubr.msk.f32.vlgmr.msra.gmra.mrb[32].mxu1 %vm57_vm1, %v579_v56  ;;  %1935 = vmatprep.mubr.msk.f32.mxu0 %vm2275_vm3, %v2276_v2  ;;  %v2100_v57 = vpop.permute.xlu1 %2099 }
 0x2b2   :  { %2051 = vmatpush3.bf16.msra.mxu0 %v2050_v16  ;;  %1900 = vmatprep.mubr.msk.f32.mxu1 %vm2275_vm3, %v2276_v2  ;;  %v2101_v2 = vunpack.i.l.bf16 %v2100_v57 }
 0x2b3   :  { %2052 = vmatprep.subr.bf16.mxu0 %v2274_v33 }
 0x383   :  { %v1149_v43 = vpop.f32.mrb[2].mxu0 }
 0x384   :  { %1154 = vst [vmem:[#allocation2 + $0x8] sm:$0xff] %v1149_v43  ;;  %v1028_v48 = vpop.f32.mrb[32].mxu1  ;;  %v1867_v30 = vpop.f32.mrb[3].mxu0  ;;  %v1159_v62 = vsel %vm1157_vm4, %v1149_v43, -inf }
 0x385   :  { %1153 = vst [vmem:[#allocation2] sm:$0xff] %v1028_v48  ;;  %1162 = vmax.xlane.f32.xlu1 %v1159_v62  ;;  %v1832_v9 = vpop.f32.mrb[33].mxu1  ;;  %v1158_v51 = vsel %vm1157_vm4, %v1028_v48, -inf }
 0x386   :  { %1160 = vmax.xlane.f32.xlu0 %v1158_v51 }
 0x396   :  { %2104 = vrot.lane.b32.xlu1 %v2103_v1, %s2277_s2 }
 0x39a   :  { %2114 = vrot.lane.b32.xlu1 %v2113_v55, %s2277_s2 }
 0x39c   :  { %2089 = vrot.lane.b32.xlu0 %v2088_v6, %s2277_s2 }
 0x39e   :  { %2124 = vrot.lane.b32.xlu1 %v2123_v35, %s2277_s2 }
 0x3a0   :  { %2109 = vrot.lane.b32.xlu0 %v2108_v13, %s2277_s2 }
 0x3a2   :  { %2134 = vrot.lane.b32.xlu1 %v2133_v47, %s2277_s2 }
 0x3a4   :  { %2119 = vrot.lane.b32.xlu0 %v2118_v22, %s2277_s2 }
 0x3a6   :  { %2144 = vrot.lane.b32.xlu1 %v2143_v7, %s2277_s2 }
 0x3a8   :  { %2129 = vrot.lane.b32.xlu0 %v2128_v14, %s2277_s2 }
 0x3aa   :  { %2154 = vrot.lane.b32.xlu1 %v2153_v17, %s2277_s2 }
 0x3ac   :  { %2139 = vrot.lane.b32.xlu0 %v2138_v32, %s2277_s2  ;;  %v2102_v32 = vunpack.i.h.bf16 %v2100_v57 }
 0x3ae   :  { %v2029_v20 = vpack.c.bf16 %v2102_v32, %v2101_v2 }
 0x3b0   :  { %2149 = vrot.lane.b32.xlu0 %v2148_v5, %s2277_s2 }
 0x412   :  { %v1163_v21 = vpop.xlane.xlu1 %1162 }
 0x413   :  { %v1165_v6 = vsub.f32 %v1159_v62, %v1163_v21  ;;  %v1161_v28 = vpop.xlane.xlu0 %1160 }
 0x414   :  { %v1164_v59 = vsub.f32 %v1158_v51, %v1161_v28 }
 0x415   :  { %v1168_v13 = vmul.f32 1.442695, %v1165_v6 }
 0x416   :  { %v1166_v19 = vmul.f32 1.442695, %v1164_v59  ;;  %v2105_v27 = vpop.permute.xlu1 %2104 }
 0x417   :  { %2236 = vpow2.f32 %v1168_v13  ;;  %v2107_v22 = vunpack.i.h.bf16 %v2105_v27  ;;  %v2106_v53 = vunpack.i.l.bf16 %v2105_v27  ;;  %v2090_v31 = vpop.permute.xlu0 %2089 }
 0x418   :  { %2238 = vpow2.f32 %v1166_v19  ;;  %v2092_v14 = vunpack.i.h.bf16 %v2090_v31  ;;  %v2091_v44 = vunpack.i.l.bf16 %v2090_v31 }
 0x419   :  { %v2053_v23 = vpack.c.bf16 %v2107_v22, %v2106_v53 }
 0x41a   :  { %v2026_v0 = vpack.c.bf16 %v2092_v14, %v2091_v44  ;;  %v2115_v61 = vpop.permute.xlu1 %2114 }
 0x41b   :  { %v2117_v5 = vunpack.i.h.bf16 %v2115_v61  ;;  %v2116_v46 = vunpack.i.l.bf16 %v2115_v61  ;;  %v2110_v50 = vpop.permute.xlu0 %2109  ;;  %2054 = vmatpush3.bf16.msra.mxu0 %v2053_v23 }
 0x41c   :  { %2027 = vmatpush3.bf16.msra.mxu1 %v2026_v0  ;;  %2055 = vmatprep.subr.bf16.mxu0 %v2274_v33  ;;  %v2112_v11 = vunpack.i.h.bf16 %v2110_v50  ;;  %v2111_v55 = vunpack.i.l.bf16 %v2110_v50  ;;  %v2248_v0 = vld [vmem:[%s3108_s0 + $0x8] sm:$0xff] }
 0x41d   :  { %v2056_v1 = vpack.c.bf16 %v2117_v5, %v2116_v46  ;;  %2028 = vmatprep.subr.bf16.mxu1 %v2274_v33  ;;  %v2249_v5 = vld [vmem:[%s3108_s0] sm:$0xff] }
 0x41e   :  { %v2125_v45 = vpop.permute.xlu1 %2124  ;;  %v2032_v47 = vpack.c.bf16 %v2112_v11, %v2111_v55 }
 0x41f   :  { %v2127_v10 = vunpack.i.h.bf16 %v2125_v45  ;;  %v2126_v54 = vunpack.i.l.bf16 %v2125_v45  ;;  %v2120_v35 = vpop.permute.xlu0 %2119  ;;  %2057 = vmatpush3.bf16.msra.mxu0 %v2056_v1 }
 0x420   :  { %2030 = vmatpush3.bf16.msra.mxu1 %v2029_v20  ;;  %2058 = vmatprep.subr.bf16.mxu0 %v2274_v33  ;;  %v2122_v40 = vunpack.i.h.bf16 %v2120_v35  ;;  %v2121_v37 = vunpack.i.l.bf16 %v2120_v35 }
 0x421   :  { %v3040_v36 = vpop.eup %2236  ;;  %v2059_v24 = vpack.c.bf16 %v2127_v10, %v2126_v54  ;;  %2031 = vmatprep.subr.bf16.mxu1 %v2274_v33 }
 0x422   :  { %v3043_v12 = vpop.eup %2238  ;;  %1172 = vadd.xlane.f32.xlu1 %v3040_v36  ;;  %v2135_v8 = vpop.permute.xlu1 %2134  ;;  %v2035_v17 = vpack.c.bf16 %v2122_v40, %v2121_v37  ;;  %v1445_v40 = vld [vmem:[%s3112_s4 + $0x8] sm:$0xff] }
 0x423   :  { %v2137_v7 = vunpack.i.h.bf16 %v2135_v8  ;;  %v2136_v52 = vunpack.i.l.bf16 %v2135_v8  ;;  %1170 = vadd.xlane.f32.xlu0 %v3043_v12  ;;  %v2130_v3 = vpop.permute.xlu0 %2129  ;;  %2060 = vmatpush3.bf16.msra.mxu0 %v2059_v24  ;;  %v1446_v8 = vld [vmem:[%s3112_s4 + $0x10] sm:$0xff] }
 0x424   :  { %2033 = vmatpush3.bf16.msra.mxu1 %v2032_v47  ;;  %2061 = vmatprep.subr.bf16.mxu0 %v2274_v33  ;;  %v2132_v39 = vunpack.i.h.bf16 %v2130_v3  ;;  %v2131_v25 = vunpack.i.l.bf16 %v2130_v3  ;;  %v1444_v47 = vld [vmem:[%s3112_s4] sm:$0xff] }
 0x425   :  { %v2062_v58 = vpack.c.bf16 %v2137_v7, %v2136_v52  ;;  %2034 = vmatprep.subr.bf16.mxu1 %v2274_v33  ;;  %v2073_v37 = vpack.c.bf16 %v1445_v40, %v1444_v47  ;;  %v1447_v7 = vld [vmem:[%s3112_s4 + $0x18] sm:$0xff]  ;;  %s2278_s4 = smov [#allocation2]  }
 0x426   :  { %v2145_v49 = vpop.permute.xlu1 %2144  ;;  %v2038_v56 = vpack.c.bf16 %v2132_v39, %v2131_v25  ;;  %v2077_v52 = vpack.c.bf16 %v1447_v7, %v1446_v8  ;;  %s1538_s13 = sshll.u32 %s2278_s4, 4  ;;  %s1539_s13 = int_to_ptr.vmem [resolvable:$true] %s1538_s13 }
 0x427   :  { %v2147_v18 = vunpack.i.h.bf16 %v2145_v49  ;;  %v2146_v15 = vunpack.i.l.bf16 %v2145_v49  ;;  %v2140_v16 = vpop.permute.xlu0 %2139  ;;  %2063 = vmatpush3.bf16.msra.mxu0 %v2062_v58  ;;  %s2250_s14 = scalar_lea.vmem %s1539_s13, 256  ;;  %p2255_p1 = scmp.lt.s32.totalorder %s1539_s13, %s1539_s13 }
 0x428   :  { %2036 = vmatpush3.bf16.msra.mxu1 %v2035_v17  ;;  %2064 = vmatprep.subr.bf16.mxu0 %v2274_v33  ;;  %v2142_v26 = vunpack.i.h.bf16 %v2140_v16  ;;  %v2141_v38 = vunpack.i.l.bf16 %v2140_v16  ;;  %p2251_p0 = scmp.ne.s32.totalorder %s1539_s13, %s2250_s14  ;;  %p2256_p2 = scmp.lt.s32.totalorder %s2250_s14, %s2250_s14 }
 0x429   :  { %v2065_v34 = vpack.c.bf16 %v2147_v18, %v2146_v15  ;;  %2037 = vmatprep.subr.bf16.mxu1 %v2274_v33 }
 0x42a   :  { %v2155_v43 = vpop.permute.xlu1 %2154  ;;  %v2041_v51 = vpack.c.bf16 %v2142_v26, %v2141_v38  ;;  %p2257_p3 = por %p2256_p2, %p2255_p1 }
 0x42b   :  { %v2157_v48 = vunpack.i.h.bf16 %v2155_v43  ;;  %v2156_v30 = vunpack.i.l.bf16 %v2155_v43  ;;  %v2150_v62 = vpop.permute.xlu0 %2149  ;;  %2066 = vmatpush3.bf16.msra.mxu0 %v2065_v34 }
 0x42c   :  { %2039 = vmatpush3.bf16.msra.mxu1 %v2038_v56  ;;  %2067 = vmatprep.subr.bf16.mxu0 %v2274_v33  ;;  %v2152_v57 = vunpack.i.h.bf16 %v2150_v62  ;;  %v2151_v21 = vunpack.i.l.bf16 %v2150_v62  ;;  %p2258_p4 = pnand %p2257_p3, %p2251_p0 }
 0x42d   :  { %v2068_v9 = vpack.c.bf16 %v2157_v48, %v2156_v30  ;;  %2040 = vmatprep.subr.bf16.mxu1 %v2274_v33 }
 0x42e   :  { %v2044_v6 = vpack.c.bf16 %v2152_v57, %v2151_v21 }
 0x42f   :  { %2069 = vmatpush3.bf16.msra.mxu0 %v2068_v9 }
 0x430   :  { %2042 = vmatpush3.bf16.msra.mxu1 %v2041_v51  ;;  %2070 = vmatprep.subr.bf16.mxu0 %v2274_v33 }
 0x431   :  { %2043 = vmatprep.subr.bf16.mxu1 %v2274_v33 }
 0x433   :  { %2164 = vrot.lane.b32.xlu1 %v2163_v60, %s2277_s2 }
 0x434   :  { %2045 = vmatpush3.bf16.msra.mxu1 %v2044_v6 }
 0x435   :  { %2046 = vmatprep.subr.bf16.mxu1 %v2274_v33 }
 0x439   :  { %2159 = vrot.lane.b32.xlu0 %v2158_v41, %s2277_s2 }
 0x4af   :  { %v1173_v28 = vpop.xlane.xlu1 %1172 }
 0x4b0   :  { %2240 = vrcp.f32 %v1173_v28  ;;  %v1171_v59 = vpop.xlane.xlu0 %1170 }
 0x4b1   :  { %2242 = vrcp.f32 %v1171_v59 }
 0x4b3   :  { %v2165_v13 = vpop.permute.xlu1 %2164 }
 0x4b4   :  { %v2167_v19 = vunpack.i.h.bf16 %v2165_v13  ;;  %v2166_v27 = vunpack.i.l.bf16 %v2165_v13  ;;  %v2160_v22 = vpop.permute.xlu0 %2159 }
 0x4b5   :  { %v2162_v53 = vunpack.i.h.bf16 %v2160_v22  ;;  %v2161_v31 = vunpack.i.l.bf16 %v2160_v22 }
 0x4b6   :  { %v2071_v63 = vpack.c.bf16 %v2167_v19, %v2166_v27 }
 0x4b7   :  { %v2047_v4 = vpack.c.bf16 %v2162_v53, %v2161_v31 }
 0x4b8   :  { %2072 = vmatpush3.bf16.msra.mxu0 %v2071_v63 }
 0x4b9   :  { %2048 = vmatpush3.bf16.msra.mxu1 %v2047_v4 }
 0x4ba   :  { %v2241_v33 = vpop.eup %2240  ;;  %2074 = vmatprep.subr.bf16.mxu1 %v2073_v37 }
 0x4bb   :  { %v2243_v60 = vpop.eup %2242  ;;  %v1177_v14 = vmul.f32 %v2241_v33, %v3040_v36 }
 0x4bc   :  { %v1176_v29 = vmul.f32 %v2243_v60, %v3043_v12 }
 0x4bd   :  { %1936 = vmatmul.mubr.f32.vlgmr.msra.gmra.mrb[4].mxu0 %v1177_v14 }
 0x4be   :  { %1901 = vmatmul.mubr.f32.vlgmr.msra.gmra.mrb[34].mxu1 %v1176_v29 }
 0x4bf   :  { %2076 = vmatpush3.bf16.msra.mxu1 %v2073_v37 }
 0x4c0   :  { %2078 = vmatprep.subr.bf16.mxu1 %v2077_v52 }
 0x4c3   :  { %2080 = vmatpush3.bf16.msra.mxu1 %v2077_v52 }
 0x590   :  { %v1410_v42 = vpop.f32.mrb[4].mxu0 }
 0x591   :  { %v1415_v41 = vmax.f32 %v1410_v42, 0.0  ;;  %v1292_v44 = vpop.f32.mrb[34].mxu1  ;;  %v1937_v23 = vpop.f32.mrb[5].mxu0 }
 0x592   :  { %v1414_v32 = vmax.f32 %v1292_v44, 0.0  ;;  %v1902_v2 = vpop.f32.mrb[35].mxu1 }
 0x593   :  { %v1417_v61 = vadd.f32 %v2248_v0, %v1415_v41 }
 0x594   :  { %v1416_v46 = vadd.f32 %v2249_v5, %v1414_v32 }
 0x595   :  { %v1421_v50 = vsel %vm57_vm1, %v1417_v61, 0.0 }
 0x596   :  { %1422 = vadd.xlane.f32.xlu1 %v1421_v50  ;;  %v1418_v1 = vsel %vm57_vm1, %v1416_v46, 0.0 }
 0x597   :  { %1419 = vadd.xlane.f32.xlu0 %v1418_v1 }
 0x623   :  { %v1423_v20 = vpop.xlane.xlu1 %1422 }
 0x624   :  { %v1425_v11 = vmul.f32 0.03125, %v1423_v20  ;;  %v1420_v55 = vpop.xlane.xlu0 %1419 }
 0x625   :  { %v1424_v45 = vmul.f32 0.03125, %v1420_v55 }
 0x626   :  { %v1427_v10 = vsub.f32 %v1417_v61, %v1425_v11 }
 0x627   :  { %v1426_v54 = vsub.f32 %v1416_v46, %v1424_v45 }
 0x628   :  { %v1429_v24 = vmul.f32 %v1427_v10, %v1427_v10 }
 0x629   :  { %v1428_v35 = vmul.f32 %v1426_v54, %v1426_v54 }
 0x62a   :  { %v1433_v12 = vsel %vm57_vm1, %v1429_v24, 0.0 }
 0x62b   :  { %v1430_v36 = vsel %vm57_vm1, %v1428_v35, 0.0 }
 0x62c   :  { %1431 = vadd.xlane.f32.xlu0 %v1430_v36 }
 0x630   :  { %1434 = vadd.xlane.f32.xlu0 %v1433_v12 }
 0x6b9   :  { %v1432_v3 = vpop.xlane.xlu0 %1431 }
 0x6ba   :  { %v1436_v58 = vmul.f32 0.03125, %v1432_v3 }
 0x6bc   :  { %v1438_v17 = vadd.f32 1e-05, %v1436_v58 }
 0x6bd   :  { %v1435_v39 = vpop.xlane.xlu0 %1434 }
 0x6be   :  { %2244 = vrsqrt.f32 %v1438_v17  ;;  %v1437_v25 = vmul.f32 0.03125, %v1435_v39 }
 0x6c0   :  { %v1439_v49 = vadd.f32 1e-05, %v1437_v25 }
 0x6c2   :  { %2246 = vrsqrt.f32 %v1439_v49 }
 0x6c8   :  { %v2245_v18 = vpop.eup %2244 }
 0x6c9   :  { %v1442_v15 = vmul.f32 %v2245_v18, %v1426_v54 }
 0x6cb   :  { %1946 = vmatprep.mubr.msk.f32.mxu1 %vm57_vm1, %v1442_v15 }
 0x6cc   :  { %v2247_v16 = vpop.eup %2246 }
 0x6cd   :  { %v1443_v34 = vmul.f32 %v2247_v16, %v1427_v10 }
 0x6cf   :  { %1947 = vmatmul.mubr.msk.f32.vlgmr.msra.gmra.mrb[36].mxu1 %vm57_vm1, %v1443_v34 }
 0x6d0   :  { %2261 = shalt.err (!%p2258_p4)
}
 0x6d1   :  { %s2262_s17 = scalar_lea.hbm %s3114_s6, 256 }
 0x6d2   :  { %p2263_p5 = scmp.ne.s32.totalorder %s3114_s6, %s2262_s17  ;;  %p2266_p6 = scmp.lt.u32.totalorder %s2262_s17, %s3114_s6 }
 0x6d4   :  { %p2268_p7 = pnand %p2266_p6, %p2263_p5 }
 0x6d6   :  { %2271 = shalt.err (!%p2268_p7)
}
 0x6d7   :  { %s2279_s21 = smov 128   ;;  %s2280_s22 = smov 8  }
 0x6d8   :  { %1544 = dma.vmem_to_hbm [thread:$0]  %s1539_s13, 256, %s3114_s6, [#allocation3], %s2279_s21, %s2279_s21, %s2280_s22  }
 0x7a2   :  { %v1948_v56 = vpop.f32.mrb[36].mxu1 }
 0x7a3   :  { %1530 = vst [vmem:[%s3113_s5 + $0x8] sm:$0xff] %v1948_v56  ;;  %v1520_v26 = vpop.f32.mrb[37].mxu1 }
 0x7a4   :  { %1529 = vst [vmem:[%s3113_s5] sm:$0xff] %v1520_v26 }
 0x7a5   :  { %2272 = dma.done.wait [#allocation3], 256  }
 0x7a6   :  { %2273 = vsyncadd [#allocation3], 4294967040 }
 0x7a7   :  { %1550 = vsyncpa [#allocation3], 1 }

</bundles_post_ra>
